<compile_context>
chip_gen: v7x
topology: tpu7x:2x2x1
jax: 0.10.0
libtpu: 0.0.40
codegen_flags: <defaults>
</compile_context>

<pallas_src>
import jax
import jax.numpy as jnp
from jax.experimental import pallas as pl
from jax.experimental.pallas import tpu as pltpu


def _make_lstm_kernel(time_chunk, backward):
    """Builds the recurrence kernel for a fixed chunk size / direction."""

    def kernel(gx_ref, whh_ref, y_ref, hN_ref, cN_ref, h_sc, c_sc):
        # gx_ref : (TC, 4, B, H)  precomputed x @ W_ih + b (bf16), gate-major
        # whh_ref: (4, H, H)      recurrent weights, gate order (i, f, g, o)
        # y_ref  : (TC, B, H)     per-step hidden outputs for this time chunk
        # hN/cN  : (B, H)         final state, written only on the last step
        # h_sc/c_sc: (B, H) f32   state carried across grid steps in VMEM
        chunk = pl.program_id(0)

        @pl.when(chunk == 0)
        def _():
            h_sc[...] = jnp.zeros_like(h_sc)
            c_sc[...] = jnp.zeros_like(c_sc)

        h = h_sc[...]
        c = c_sc[...]

        # Fully-unrolled inner time loop with static indices (equivalent to
        # lax.fori_loop(..., unroll=True) for these small chunk sizes).
        order = range(time_chunk - 1, -1, -1) if backward else range(time_chunk)
        for lt in order:
            gx = gx_ref[lt]                       # (4, B, H) bf16, free view
            h_mx = h.astype(whh_ref.dtype)        # bf16 operand for the MXU
            # Gate-major: four (B,H)x(H,H) matmuls -> no lane slicing of (B,4H).
            z_i = jnp.dot(h_mx, whh_ref[0],
                          preferred_element_type=jnp.float32) + gx[0].astype(jnp.float32)
            z_f = jnp.dot(h_mx, whh_ref[1],
                          preferred_element_type=jnp.float32) + gx[1].astype(jnp.float32)
            z_g = jnp.dot(h_mx, whh_ref[2],
                          preferred_element_type=jnp.float32) + gx[2].astype(jnp.float32)
            z_o = jnp.dot(h_mx, whh_ref[3],
                          preferred_element_type=jnp.float32) + gx[3].astype(jnp.float32)
            i_g = jax.nn.sigmoid(z_i)
            f_g = jax.nn.sigmoid(z_f)
            g_g = jnp.tanh(z_g)
            o_g = jax.nn.sigmoid(z_o)
            c = f_g * c + i_g * g_g               # f32 elementwise update
            h = o_g * jnp.tanh(c)
            y_ref[lt] = h.astype(y_ref.dtype)

        h_sc[...] = h
        c_sc[...] = c

        @pl.when(chunk == pl.num_programs(0) - 1)
        def _():
            hN_ref[...] = h.astype(hN_ref.dtype)
            cN_ref[...] = c.astype(cN_ref.dtype)

    return kernel


def lstm_layer(gx_tm, w_hh, *, backward=True, out_dtype=jnp.float32,
               time_chunk=8):
    """Recurrent part of one (uni-directional) LSTM layer.

    gx_tm: (T, 4, B, H) precomputed input gates (x @ W_ih + b_ih + b_hh).
    w_hh : (4, H, H)    recurrent weights, PyTorch gate order (i, f, g, o).
    Returns (y (T, B, H), h_N (B, H), c_N (B, H)).
    backward=True consumes the sequence from t=T-1 down to 0; the output at
    index t is the state after consuming x[t] (so y[0] == h_N), matching a
    backward RNN layer.
    """
    T, G, B, H = gx_tm.shape
    assert G == 4 and w_hh.shape == (4, H, H)

    # Largest chunk size <= time_chunk that divides T (keeps the grid exact).
    TC = 1
    for d in range(min(time_chunk, T), 0, -1):
        if T % d == 0:
            TC = d
            break
    NC = T // TC

    if backward:
        gx_map = lambda c: (NC - 1 - c, 0, 0, 0)
        y_map = lambda c: (NC - 1 - c, 0, 0)
    else:
        gx_map = lambda c: (c, 0, 0, 0)
        y_map = lambda c: (c, 0, 0)

    # TODO(synk): on v7x, shard the batch over the 2 TensorCores (core-parallel
    # leading grid axis) when B is large; not meaningful at B=2.
    y, hN, cN = pl.pallas_call(
        _make_lstm_kernel(TC, backward),
        out_shape=(
            jax.ShapeDtypeStruct((T, B, H), out_dtype),
            jax.ShapeDtypeStruct((B, H), out_dtype),
            jax.ShapeDtypeStruct((B, H), out_dtype),
        ),
        grid_spec=pltpu.PrefetchScalarGridSpec(
            num_scalar_prefetch=0,
            grid=(NC,),
            in_specs=[
                pl.BlockSpec((TC, 4, B, H), gx_map),
                pl.BlockSpec((4, H, H), lambda c: (0, 0, 0)),
            ],
            out_specs=[
                pl.BlockSpec((TC, B, H), y_map),
                pl.BlockSpec((B, H), lambda c: (0, 0)),
                pl.BlockSpec((B, H), lambda c: (0, 0)),
            ],
            scratch_shapes=[
                pltpu.VMEM((B, H), jnp.float32),   # h state (f32, persists)
                pltpu.VMEM((B, H), jnp.float32),   # c state (f32, persists)
            ],
        ),
        compiler_params=pltpu.CompilerParams(
            dimension_semantics=("arbitrary",)),   # recurrence -> serial grid
    )(gx_tm, w_hh)
    return y, hN, cN


def init_encoder_params(key, vocab_size, embed_size, hidden_size, n_layers):
    keys = jax.random.split(key, 1 + 4 * n_layers)
    emb = 0.1 * jax.random.normal(keys[0], (vocab_size, embed_size), jnp.float32)
    layers = []
    for i in range(n_layers):
        d_in = embed_size if i == 0 else hidden_size
        k = keys[1 + 4 * i: 1 + 4 * (i + 1)]
        # Gate-major layouts: W_ih (D, 4, H), W_hh (4, H, H), bias (4, H);
        # gate order along the 4-axis is PyTorch's (i, f, g, o).
        w_ih = 0.1 * jax.random.normal(k[0], (d_in, 4, hidden_size), jnp.float32)
        w_hh = 0.1 * jax.random.normal(k[1], (4, hidden_size, hidden_size), jnp.float32)
        b_ih = 0.1 * jax.random.normal(k[2], (4, hidden_size), jnp.float32)
        b_hh = 0.1 * jax.random.normal(k[3], (4, hidden_size), jnp.float32)
        layers.append((w_ih, w_hh, b_ih + b_hh))
    return emb, layers


def encoder_forward(params, tokens, *, compute_dtype=jnp.bfloat16):
    """tokens: (B, T) int32.  Returns (output (B, T, H),
    (h (n_layers, B, H), c (n_layers, B, H))) — mirrors Encoder.forward with
    cell='lstm', n_layers=len(layers), direction='backward', layer_norm=False."""
    emb, layers = params
    x = jnp.take(emb, tokens, axis=0)            # (B, T, E) embedding gather (glue)
    x_tm = jnp.transpose(x, (1, 0, 2))           # to time-major ONCE
    hs, cs = [], []
    for (w_ih, w_hh, b) in layers:
        # Hoisted input projection: ONE batched matmul over all T timesteps,
        # bf16 operands / f32 accumulation, gate-major output (T, 4, B, H).
        gx = jnp.einsum('tbd,dgh->tgbh',
                        x_tm.astype(compute_dtype), w_ih.astype(compute_dtype),
                        preferred_element_type=jnp.float32)
        gx = (gx + b[None, :, None, :]).astype(compute_dtype)
        y_tm, hN, cN = lstm_layer(gx, w_hh.astype(compute_dtype),
                                  backward=True, out_dtype=jnp.float32)
        x_tm = y_tm                              # stays time-major between layers
        hs.append(hN)
        cs.append(cN)
    output = jnp.transpose(x_tm, (1, 0, 2))      # back to (B, T, H) ONCE
    h = jnp.stack(hs, axis=0)                    # (n_layers, B, H)
    c = jnp.stack(cs, axis=0)                    # (n_layers, B, H)
    return output, (h, c)
    # TODO(synk): padding_idx handling of Embedding is omitted (padding_idx=None here).


if __name__ == "__main__":
    VOCAB, EMBED, HIDDEN, N_LAYERS = 50, 16, 32, 4
    B, T = 2, 8

    key = jax.random.PRNGKey(0)
    k_tok, k_par = jax.random.split(key)
    tokens = jax.random.randint(k_tok, (B, T), 0, VOCAB, dtype=jnp.int32)
    params = init_encoder_params(k_par, VOCAB, EMBED, HIDDEN, N_LAYERS)

    fwd = jax.jit(encoder_forward)
    output, (h, c) = fwd(params, tokens)
    jax.block_until_ready((output, h, c))

    assert output.shape == (B, T, HIDDEN)
    assert h.shape == (N_LAYERS, B, HIDDEN)
    assert c.shape == (N_LAYERS, B, HIDDEN)
    print("KERNEL_OK")
</pallas_src>

<mosaic_0001>
module attributes {stable_mosaic.version = 11 : i64} {
  func.func @kernel(%arg0: i32, %arg1: memref<8x4x2x32xbf16, #tpu.memory_space<vmem>>, %arg2: memref<4x32x32xbf16, #tpu.memory_space<vmem>>, %arg3: memref<8x2x32xf32, #tpu.memory_space<vmem>>, %arg4: memref<2x32xf32, #tpu.memory_space<vmem>>, %arg5: memref<2x32xf32, #tpu.memory_space<vmem>>, %arg6: memref<2x32xf32, #tpu.memory_space<vmem>>, %arg7: memref<2x32xf32, #tpu.memory_space<vmem>>) attributes {dimension_semantics = [#tpu.dimension_semantics<arbitrary>], iteration_bounds = array<i64: 1>, scalar_prefetch = 0 : i64, scratch_operands = 2 : i64, tpu.core_type = #tpu.core_type<tc>, window_params = [{transform_indices = @transform_0, window_bounds = array<i64: 8, 4, 2, 32>}, {pipeline_mode = #tpu.pipeline_mode<synchronous>, transform_indices = @transform_1, window_bounds = array<i64: 4, 32, 32>}, {transform_indices = @transform_2, window_bounds = array<i64: 8, 2, 32>}, {pipeline_mode = #tpu.pipeline_mode<synchronous>, transform_indices = @transform_3, window_bounds = array<i64: 2, 32>}, {pipeline_mode = #tpu.pipeline_mode<synchronous>, transform_indices = @transform_4, window_bounds = array<i64: 2, 32>}]} {
    %c0_i32 = arith.constant 0 : i32
    %0 = arith.cmpi eq, %arg0, %c0_i32 : i32
    %1 = arith.extui %0 : i1 to i32
    %c0_i32_0 = arith.constant 0 : i32
    %2 = arith.cmpi ne, %1, %c0_i32_0 : i32
    scf.if %2 {
      %cst_210 = arith.constant 0.000000e+00 : f32
      %450 = vector.broadcast %cst_210 : f32 to vector<2x32xf32>
      %c0_211 = arith.constant 0 : index
      %c0_212 = arith.constant 0 : index
      %451 = vector.load %arg6[%c0_211, %c0_212] : memref<2x32xf32, #tpu.memory_space<vmem>>, vector<2x32xf32>
      tpu.vector_store %arg6[%c0_211, %c0_212], %450 {strides = array<i32>} : memref<2x32xf32, #tpu.memory_space<vmem>>, vector<2x32xf32>,
      %cst_213 = arith.constant 0.000000e+00 : f32
      %452 = vector.broadcast %cst_213 : f32 to vector<2x32xf32>
      %c0_214 = arith.constant 0 : index
      %c0_215 = arith.constant 0 : index
      %453 = vector.load %arg7[%c0_214, %c0_215] : memref<2x32xf32, #tpu.memory_space<vmem>>, vector<2x32xf32>
      tpu.vector_store %arg7[%c0_214, %c0_215], %452 {strides = array<i32>} : memref<2x32xf32, #tpu.memory_space<vmem>>, vector<2x32xf32>,
    } else {
    }
    %c0 = arith.constant 0 : index
    %c0_1 = arith.constant 0 : index
    %3 = vector.load %arg6[%c0, %c0_1] : memref<2x32xf32, #tpu.memory_space<vmem>>, vector<2x32xf32>
    %c0_2 = arith.constant 0 : index
    %c0_3 = arith.constant 0 : index
    %4 = vector.load %arg7[%c0_2, %c0_3] : memref<2x32xf32, #tpu.memory_space<vmem>>, vector<2x32xf32>
    %c7 = arith.constant 7 : index
    %c0_4 = arith.constant 0 : index
    %c0_5 = arith.constant 0 : index
    %c0_6 = arith.constant 0 : index
    %5 = vector.load %arg1[%c7, %c0_4, %c0_5, %c0_6] : memref<8x4x2x32xbf16, #tpu.memory_space<vmem>>, vector<1x4x2x32xbf16>
    %6 = vector.shape_cast %5 : vector<1x4x2x32xbf16> to vector<4x2x32xbf16>
    %7 = arith.truncf %3 : vector<2x32xf32> to vector<2x32xbf16>
    %c0_7 = arith.constant 0 : index
    %c0_8 = arith.constant 0 : index
    %c0_9 = arith.constant 0 : index
    %8 = vector.load %arg2[%c0_7, %c0_8, %c0_9] : memref<4x32x32xbf16, #tpu.memory_space<vmem>>, vector<1x32x32xbf16>
    %9 = vector.shape_cast %8 : vector<1x32x32xbf16> to vector<32x32xbf16>
    %cst = arith.constant dense<0.000000e+00> : vector<2x32xf32>
    %10 = tpu.matmul %7, %9, %cst {dimension_numbers = #tpu.dot_dimension_numbers<[1], [0], [0], [1], [0, 0, 1, 1], [], []>} : vector<2x32xbf16>, vector<32x32xbf16>, vector<2x32xf32> -> vector<2x32xf32>
    %11 = vector.extract_strided_slice %6 {offsets = [0, 0, 0], sizes = [1, 2, 32], strides = [1, 1, 1]} : vector<4x2x32xbf16> to vector<1x2x32xbf16>
    %12 = vector.shape_cast %11 : vector<1x2x32xbf16> to vector<2x32xbf16>
    %13 = arith.extf %12 : vector<2x32xbf16> to vector<2x32xf32>
    %14 = arith.addf %10, %13 : vector<2x32xf32>
    %c1 = arith.constant 1 : index
    %c0_10 = arith.constant 0 : index
    %c0_11 = arith.constant 0 : index
    %15 = vector.load %arg2[%c1, %c0_10, %c0_11] : memref<4x32x32xbf16, #tpu.memory_space<vmem>>, vector<1x32x32xbf16>
    %16 = vector.shape_cast %15 : vector<1x32x32xbf16> to vector<32x32xbf16>
    %cst_12 = arith.constant dense<0.000000e+00> : vector<2x32xf32>
    %17 = tpu.matmul %7, %16, %cst_12 {dimension_numbers = #tpu.dot_dimension_numbers<[1], [0], [0], [1], [0, 0, 1, 1], [], []>} : vector<2x32xbf16>, vector<32x32xbf16>, vector<2x32xf32> -> vector<2x32xf32>
    %18 = vector.extract_strided_slice %6 {offsets = [1, 0, 0], sizes = [1, 2, 32], strides = [1, 1, 1]} : vector<4x2x32xbf16> to vector<1x2x32xbf16>
    %19 = vector.shape_cast %18 : vector<1x2x32xbf16> to vector<2x32xbf16>
    %20 = arith.extf %19 : vector<2x32xbf16> to vector<2x32xf32>
    %21 = arith.addf %17, %20 : vector<2x32xf32>
    %c2 = arith.constant 2 : index
    %c0_13 = arith.constant 0 : index
    %c0_14 = arith.constant 0 : index
    %22 = vector.load %arg2[%c2, %c0_13, %c0_14] : memref<4x32x32xbf16, #tpu.memory_space<vmem>>, vector<1x32x32xbf16>
    %23 = vector.shape_cast %22 : vector<1x32x32xbf16> to vector<32x32xbf16>
    %cst_15 = arith.constant dense<0.000000e+00> : vector<2x32xf32>
    %24 = tpu.matmul %7, %23, %cst_15 {dimension_numbers = #tpu.dot_dimension_numbers<[1], [0], [0], [1], [0, 0, 1, 1], [], []>} : vector<2x32xbf16>, vector<32x32xbf16>, vector<2x32xf32> -> vector<2x32xf32>
    %25 = vector.extract_strided_slice %6 {offsets = [2, 0, 0], sizes = [1, 2, 32], strides = [1, 1, 1]} : vector<4x2x32xbf16> to vector<1x2x32xbf16>
    %26 = vector.shape_cast %25 : vector<1x2x32xbf16> to vector<2x32xbf16>
    %27 = arith.extf %26 : vector<2x32xbf16> to vector<2x32xf32>
    %28 = arith.addf %24, %27 : vector<2x32xf32>
    %c3 = arith.constant 3 : index
    %c0_16 = arith.constant 0 : index
    %c0_17 = arith.constant 0 : index
    %29 = vector.load %arg2[%c3, %c0_16, %c0_17] : memref<4x32x32xbf16, #tpu.memory_space<vmem>>, vector<1x32x32xbf16>
    %30 = vector.shape_cast %29 : vector<1x32x32xbf16> to vector<32x32xbf16>
    %cst_18 = arith.constant dense<0.000000e+00> : vector<2x32xf32>
    %31 = tpu.matmul %7, %30, %cst_18 {dimension_numbers = #tpu.dot_dimension_numbers<[1], [0], [0], [1], [0, 0, 1, 1], [], []>} : vector<2x32xbf16>, vector<32x32xbf16>, vector<2x32xf32> -> vector<2x32xf32>
    %32 = vector.extract_strided_slice %6 {offsets = [3, 0, 0], sizes = [1, 2, 32], strides = [1, 1, 1]} : vector<4x2x32xbf16> to vector<1x2x32xbf16>
    %33 = vector.shape_cast %32 : vector<1x2x32xbf16> to vector<2x32xbf16>
    %34 = arith.extf %33 : vector<2x32xbf16> to vector<2x32xf32>
    %35 = arith.addf %31, %34 : vector<2x32xf32>
    %36 = arith.negf %14 : vector<2x32xf32>
    %37 = math.exp %36 : vector<2x32xf32>
    %cst_19 = arith.constant 1.000000e+00 : f32
    %38 = vector.broadcast %cst_19 : f32 to vector<2x32xf32>
    %39 = arith.addf %38, %37 : vector<2x32xf32>
    %40 = arith.divf %38, %39 : vector<2x32xf32>
    %41 = arith.negf %21 : vector<2x32xf32>
    %42 = math.exp %41 : vector<2x32xf32>
    %cst_20 = arith.constant 1.000000e+00 : f32
    %43 = vector.broadcast %cst_20 : f32 to vector<2x32xf32>
    %44 = arith.addf %43, %42 : vector<2x32xf32>
    %45 = arith.divf %43, %44 : vector<2x32xf32>
    %46 = math.tanh %28 : vector<2x32xf32>
    %47 = arith.negf %35 : vector<2x32xf32>
    %48 = math.exp %47 : vector<2x32xf32>
    %cst_21 = arith.constant 1.000000e+00 : f32
    %49 = vector.broadcast %cst_21 : f32 to vector<2x32xf32>
    %50 = arith.addf %49, %48 : vector<2x32xf32>
    %51 = arith.divf %49, %50 : vector<2x32xf32>
    %52 = arith.mulf %45, %4 : vector<2x32xf32>
    %53 = arith.mulf %40, %46 : vector<2x32xf32>
    %54 = arith.addf %52, %53 : vector<2x32xf32>
    %55 = math.tanh %54 : vector<2x32xf32>
    %56 = arith.mulf %51, %55 : vector<2x32xf32>
    %c7_22 = arith.constant 7 : index
    %c0_23 = arith.constant 0 : index
    %c0_24 = arith.constant 0 : index
    %57 = vector.load %arg3[%c7_22, %c0_23, %c0_24] : memref<8x2x32xf32, #tpu.memory_space<vmem>>, vector<1x2x32xf32>
    %58 = vector.shape_cast %57 : vector<1x2x32xf32> to vector<2x32xf32>
    %59 = vector.shape_cast %56 : vector<2x32xf32> to vector<1x2x32xf32>
    tpu.vector_store %arg3[%c7_22, %c0_23, %c0_24], %59 {strides = array<i32>} : memref<8x2x32xf32, #tpu.memory_space<vmem>>, vector<1x2x32xf32>,
    %c6 = arith.constant 6 : index
    %c0_25 = arith.constant 0 : index
    %c0_26 = arith.constant 0 : index
    %c0_27 = arith.constant 0 : index
    %60 = vector.load %arg1[%c6, %c0_25, %c0_26, %c0_27] : memref<8x4x2x32xbf16, #tpu.memory_space<vmem>>, vector<1x4x2x32xbf16>
    %61 = vector.shape_cast %60 : vector<1x4x2x32xbf16> to vector<4x2x32xbf16>
    %62 = arith.truncf %56 : vector<2x32xf32> to vector<2x32xbf16>
    %c0_28 = arith.constant 0 : index
    %c0_29 = arith.constant 0 : index
    %c0_30 = arith.constant 0 : index
    %63 = vector.load %arg2[%c0_28, %c0_29, %c0_30] : memref<4x32x32xbf16, #tpu.memory_space<vmem>>, vector<1x32x32xbf16>
    %64 = vector.shape_cast %63 : vector<1x32x32xbf16> to vector<32x32xbf16>
    %cst_31 = arith.constant dense<0.000000e+00> : vector<2x32xf32>
    %65 = tpu.matmul %62, %64, %cst_31 {dimension_numbers = #tpu.dot_dimension_numbers<[1], [0], [0], [1], [0, 0, 1, 1], [], []>} : vector<2x32xbf16>, vector<32x32xbf16>, vector<2x32xf32> -> vector<2x32xf32>
    %66 = vector.extract_strided_slice %61 {offsets = [0, 0, 0], sizes = [1, 2, 32], strides = [1, 1, 1]} : vector<4x2x32xbf16> to vector<1x2x32xbf16>
    %67 = vector.shape_cast %66 : vector<1x2x32xbf16> to vector<2x32xbf16>
    %68 = arith.extf %67 : vector<2x32xbf16> to vector<2x32xf32>
    %69 = arith.addf %65, %68 : vector<2x32xf32>
    %c1_32 = arith.constant 1 : index
    %c0_33 = arith.constant 0 : index
    %c0_34 = arith.constant 0 : index
    %70 = vector.load %arg2[%c1_32, %c0_33, %c0_34] : memref<4x32x32xbf16, #tpu.memory_space<vmem>>, vector<1x32x32xbf16>
    %71 = vector.shape_cast %70 : vector<1x32x32xbf16> to vector<32x32xbf16>
    %cst_35 = arith.constant dense<0.000000e+00> : vector<2x32xf32>
    %72 = tpu.matmul %62, %71, %cst_35 {dimension_numbers = #tpu.dot_dimension_numbers<[1], [0], [0], [1], [0, 0, 1, 1], [], []>} : vector<2x32xbf16>, vector<32x32xbf16>, vector<2x32xf32> -> vector<2x32xf32>
    %73 = vector.extract_strided_slice %61 {offsets = [1, 0, 0], sizes = [1, 2, 32], strides = [1, 1, 1]} : vector<4x2x32xbf16> to vector<1x2x32xbf16>
    %74 = vector.shape_cast %73 : vector<1x2x32xbf16> to vector<2x32xbf16>
    %75 = arith.extf %74 : vector<2x32xbf16> to vector<2x32xf32>
    %76 = arith.addf %72, %75 : vector<2x32xf32>
    %c2_36 = arith.constant 2 : index
    %c0_37 = arith.constant 0 : index
    %c0_38 = arith.constant 0 : index
    %77 = vector.load %arg2[%c2_36, %c0_37, %c0_38] : memref<4x32x32xbf16, #tpu.memory_space<vmem>>, vector<1x32x32xbf16>
    %78 = vector.shape_cast %77 : vector<1x32x32xbf16> to vector<32x32xbf16>
    %cst_39 = arith.constant dense<0.000000e+00> : vector<2x32xf32>
    %79 = tpu.matmul %62, %78, %cst_39 {dimension_numbers = #tpu.dot_dimension_numbers<[1], [0], [0], [1], [0, 0, 1, 1], [], []>} : vector<2x32xbf16>, vector<32x32xbf16>, vector<2x32xf32> -> vector<2x32xf32>
    %80 = vector.extract_strided_slice %61 {offsets = [2, 0, 0], sizes = [1, 2, 32], strides = [1, 1, 1]} : vector<4x2x32xbf16> to vector<1x2x32xbf16>
    %81 = vector.shape_cast %80 : vector<1x2x32xbf16> to vector<2x32xbf16>
    %82 = arith.extf %81 : vector<2x32xbf16> to vector<2x32xf32>
    %83 = arith.addf %79, %82 : vector<2x32xf32>
    %c3_40 = arith.constant 3 : index
    %c0_41 = arith.constant 0 : index
    %c0_42 = arith.constant 0 : index
    %84 = vector.load %arg2[%c3_40, %c0_41, %c0_42] : memref<4x32x32xbf16, #tpu.memory_space<vmem>>, vector<1x32x32xbf16>
    %85 = vector.shape_cast %84 : vector<1x32x32xbf16> to vector<32x32xbf16>
    %cst_43 = arith.constant dense<0.000000e+00> : vector<2x32xf32>
    %86 = tpu.matmul %62, %85, %cst_43 {dimension_numbers = #tpu.dot_dimension_numbers<[1], [0], [0], [1], [0, 0, 1, 1], [], []>} : vector<2x32xbf16>, vector<32x32xbf16>, vector<2x32xf32> -> vector<2x32xf32>
    %87 = vector.extract_strided_slice %61 {offsets = [3, 0, 0], sizes = [1, 2, 32], strides = [1, 1, 1]} : vector<4x2x32xbf16> to vector<1x2x32xbf16>
    %88 = vector.shape_cast %87 : vector<1x2x32xbf16> to vector<2x32xbf16>
    %89 = arith.extf %88 : vector<2x32xbf16> to vector<2x32xf32>
    %90 = arith.addf %86, %89 : vector<2x32xf32>
    %91 = arith.negf %69 : vector<2x32xf32>
    %92 = math.exp %91 : vector<2x32xf32>
    %cst_44 = arith.constant 1.000000e+00 : f32
    %93 = vector.broadcast %cst_44 : f32 to vector<2x32xf32>
    %94 = arith.addf %93, %92 : vector<2x32xf32>
    %95 = arith.divf %93, %94 : vector<2x32xf32>
    %96 = arith.negf %76 : vector<2x32xf32>
    %97 = math.exp %96 : vector<2x32xf32>
    %cst_45 = arith.constant 1.000000e+00 : f32
    %98 = vector.broadcast %cst_45 : f32 to vector<2x32xf32>
    %99 = arith.addf %98, %97 : vector<2x32xf32>
    %100 = arith.divf %98, %99 : vector<2x32xf32>
    %101 = math.tanh %83 : vector<2x32xf32>
    %102 = arith.negf %90 : vector<2x32xf32>
    %103 = math.exp %102 : vector<2x32xf32>
    %cst_46 = arith.constant 1.000000e+00 : f32
    %104 = vector.broadcast %cst_46 : f32 to vector<2x32xf32>
    %105 = arith.addf %104, %103 : vector<2x32xf32>
    %106 = arith.divf %104, %105 : vector<2x32xf32>
    %107 = arith.mulf %100, %54 : vector<2x32xf32>
    %108 = arith.mulf %95, %101 : vector<2x32xf32>
    %109 = arith.addf %107, %108 : vector<2x32xf32>
    %110 = math.tanh %109 : vector<2x32xf32>
    %111 = arith.mulf %106, %110 : vector<2x32xf32>
    %c6_47 = arith.constant 6 : index
    %c0_48 = arith.constant 0 : index
    %c0_49 = arith.constant 0 : index
    %112 = vector.load %arg3[%c6_47, %c0_48, %c0_49] : memref<8x2x32xf32, #tpu.memory_space<vmem>>, vector<1x2x32xf32>
    %113 = vector.shape_cast %112 : vector<1x2x32xf32> to vector<2x32xf32>
    %114 = vector.shape_cast %111 : vector<2x32xf32> to vector<1x2x32xf32>
    tpu.vector_store %arg3[%c6_47, %c0_48, %c0_49], %114 {strides = array<i32>} : memref<8x2x32xf32, #tpu.memory_space<vmem>>, vector<1x2x32xf32>,
    %c5 = arith.constant 5 : index
    %c0_50 = arith.constant 0 : index
    %c0_51 = arith.constant 0 : index
    %c0_52 = arith.constant 0 : index
    %115 = vector.load %arg1[%c5, %c0_50, %c0_51, %c0_52] : memref<8x4x2x32xbf16, #tpu.memory_space<vmem>>, vector<1x4x2x32xbf16>
    %116 = vector.shape_cast %115 : vector<1x4x2x32xbf16> to vector<4x2x32xbf16>
    %117 = arith.truncf %111 : vector<2x32xf32> to vector<2x32xbf16>
    %c0_53 = arith.constant 0 : index
    %c0_54 = arith.constant 0 : index
    %c0_55 = arith.constant 0 : index
    %118 = vector.load %arg2[%c0_53, %c0_54, %c0_55] : memref<4x32x32xbf16, #tpu.memory_space<vmem>>, vector<1x32x32xbf16>
    %119 = vector.shape_cast %118 : vector<1x32x32xbf16> to vector<32x32xbf16>
    %cst_56 = arith.constant dense<0.000000e+00> : vector<2x32xf32>
    %120 = tpu.matmul %117, %119, %cst_56 {dimension_numbers = #tpu.dot_dimension_numbers<[1], [0], [0], [1], [0, 0, 1, 1], [], []>} : vector<2x32xbf16>, vector<32x32xbf16>, vector<2x32xf32> -> vector<2x32xf32>
    %121 = vector.extract_strided_slice %116 {offsets = [0, 0, 0], sizes = [1, 2, 32], strides = [1, 1, 1]} : vector<4x2x32xbf16> to vector<1x2x32xbf16>
    %122 = vector.shape_cast %121 : vector<1x2x32xbf16> to vector<2x32xbf16>
    %123 = arith.extf %122 : vector<2x32xbf16> to vector<2x32xf32>
    %124 = arith.addf %120, %123 : vector<2x32xf32>
    %c1_57 = arith.constant 1 : index
    %c0_58 = arith.constant 0 : index
    %c0_59 = arith.constant 0 : index
    %125 = vector.load %arg2[%c1_57, %c0_58, %c0_59] : memref<4x32x32xbf16, #tpu.memory_space<vmem>>, vector<1x32x32xbf16>
    %126 = vector.shape_cast %125 : vector<1x32x32xbf16> to vector<32x32xbf16>
    %cst_60 = arith.constant dense<0.000000e+00> : vector<2x32xf32>
    %127 = tpu.matmul %117, %126, %cst_60 {dimension_numbers = #tpu.dot_dimension_numbers<[1], [0], [0], [1], [0, 0, 1, 1], [], []>} : vector<2x32xbf16>, vector<32x32xbf16>, vector<2x32xf32> -> vector<2x32xf32>
    %128 = vector.extract_strided_slice %116 {offsets = [1, 0, 0], sizes = [1, 2, 32], strides = [1, 1, 1]} : vector<4x2x32xbf16> to vector<1x2x32xbf16>
    %129 = vector.shape_cast %128 : vector<1x2x32xbf16> to vector<2x32xbf16>
    %130 = arith.extf %129 : vector<2x32xbf16> to vector<2x32xf32>
    %131 = arith.addf %127, %130 : vector<2x32xf32>
    %c2_61 = arith.constant 2 : index
    %c0_62 = arith.constant 0 : index
    %c0_63 = arith.constant 0 : index
    %132 = vector.load %arg2[%c2_61, %c0_62, %c0_63] : memref<4x32x32xbf16, #tpu.memory_space<vmem>>, vector<1x32x32xbf16>
    %133 = vector.shape_cast %132 : vector<1x32x32xbf16> to vector<32x32xbf16>
    %cst_64 = arith.constant dense<0.000000e+00> : vector<2x32xf32>
    %134 = tpu.matmul %117, %133, %cst_64 {dimension_numbers = #tpu.dot_dimension_numbers<[1], [0], [0], [1], [0, 0, 1, 1], [], []>} : vector<2x32xbf16>, vector<32x32xbf16>, vector<2x32xf32> -> vector<2x32xf32>
    %135 = vector.extract_strided_slice %116 {offsets = [2, 0, 0], sizes = [1, 2, 32], strides = [1, 1, 1]} : vector<4x2x32xbf16> to vector<1x2x32xbf16>
    %136 = vector.shape_cast %135 : vector<1x2x32xbf16> to vector<2x32xbf16>
    %137 = arith.extf %136 : vector<2x32xbf16> to vector<2x32xf32>
    %138 = arith.addf %134, %137 : vector<2x32xf32>
    %c3_65 = arith.constant 3 : index
    %c0_66 = arith.constant 0 : index
    %c0_67 = arith.constant 0 : index
    %139 = vector.load %arg2[%c3_65, %c0_66, %c0_67] : memref<4x32x32xbf16, #tpu.memory_space<vmem>>, vector<1x32x32xbf16>
    %140 = vector.shape_cast %139 : vector<1x32x32xbf16> to vector<32x32xbf16>
    %cst_68 = arith.constant dense<0.000000e+00> : vector<2x32xf32>
    %141 = tpu.matmul %117, %140, %cst_68 {dimension_numbers = #tpu.dot_dimension_numbers<[1], [0], [0], [1], [0, 0, 1, 1], [], []>} : vector<2x32xbf16>, vector<32x32xbf16>, vector<2x32xf32> -> vector<2x32xf32>
    %142 = vector.extract_strided_slice %116 {offsets = [3, 0, 0], sizes = [1, 2, 32], strides = [1, 1, 1]} : vector<4x2x32xbf16> to vector<1x2x32xbf16>
    %143 = vector.shape_cast %142 : vector<1x2x32xbf16> to vector<2x32xbf16>
    %144 = arith.extf %143 : vector<2x32xbf16> to vector<2x32xf32>
    %145 = arith.addf %141, %144 : vector<2x32xf32>
    %146 = arith.negf %124 : vector<2x32xf32>
    %147 = math.exp %146 : vector<2x32xf32>
    %cst_69 = arith.constant 1.000000e+00 : f32
    %148 = vector.broadcast %cst_69 : f32 to vector<2x32xf32>
    %149 = arith.addf %148, %147 : vector<2x32xf32>
    %150 = arith.divf %148, %149 : vector<2x32xf32>
    %151 = arith.negf %131 : vector<2x32xf32>
    %152 = math.exp %151 : vector<2x32xf32>
    %cst_70 = arith.constant 1.000000e+00 : f32
    %153 = vector.broadcast %cst_70 : f32 to vector<2x32xf32>
    %154 = arith.addf %153, %152 : vector<2x32xf32>
    %155 = arith.divf %153, %154 : vector<2x32xf32>
    %156 = math.tanh %138 : vector<2x32xf32>
    %157 = arith.negf %145 : vector<2x32xf32>
    %158 = math.exp %157 : vector<2x32xf32>
    %cst_71 = arith.constant 1.000000e+00 : f32
    %159 = vector.broadcast %cst_71 : f32 to vector<2x32xf32>
    %160 = arith.addf %159, %158 : vector<2x32xf32>
    %161 = arith.divf %159, %160 : vector<2x32xf32>
    %162 = arith.mulf %155, %109 : vector<2x32xf32>
    %163 = arith.mulf %150, %156 : vector<2x32xf32>
    %164 = arith.addf %162, %163 : vector<2x32xf32>
    %165 = math.tanh %164 : vector<2x32xf32>
    %166 = arith.mulf %161, %165 : vector<2x32xf32>
    %c5_72 = arith.constant 5 : index
    %c0_73 = arith.constant 0 : index
    %c0_74 = arith.constant 0 : index
    %167 = vector.load %arg3[%c5_72, %c0_73, %c0_74] : memref<8x2x32xf32, #tpu.memory_space<vmem>>, vector<1x2x32xf32>
    %168 = vector.shape_cast %167 : vector<1x2x32xf32> to vector<2x32xf32>
    %169 = vector.shape_cast %166 : vector<2x32xf32> to vector<1x2x32xf32>
    tpu.vector_store %arg3[%c5_72, %c0_73, %c0_74], %169 {strides = array<i32>} : memref<8x2x32xf32, #tpu.memory_space<vmem>>, vector<1x2x32xf32>,
    %c4 = arith.constant 4 : index
    %c0_75 = arith.constant 0 : index
    %c0_76 = arith.constant 0 : index
    %c0_77 = arith.constant 0 : index
    %170 = vector.load %arg1[%c4, %c0_75, %c0_76, %c0_77] : memref<8x4x2x32xbf16, #tpu.memory_space<vmem>>, vector<1x4x2x32xbf16>
    %171 = vector.shape_cast %170 : vector<1x4x2x32xbf16> to vector<4x2x32xbf16>
    %172 = arith.truncf %166 : vector<2x32xf32> to vector<2x32xbf16>
    %c0_78 = arith.constant 0 : index
    %c0_79 = arith.constant 0 : index
    %c0_80 = arith.constant 0 : index
    %173 = vector.load %arg2[%c0_78, %c0_79, %c0_80] : memref<4x32x32xbf16, #tpu.memory_space<vmem>>, vector<1x32x32xbf16>
    %174 = vector.shape_cast %173 : vector<1x32x32xbf16> to vector<32x32xbf16>
    %cst_81 = arith.constant dense<0.000000e+00> : vector<2x32xf32>
    %175 = tpu.matmul %172, %174, %cst_81 {dimension_numbers = #tpu.dot_dimension_numbers<[1], [0], [0], [1], [0, 0, 1, 1], [], []>} : vector<2x32xbf16>, vector<32x32xbf16>, vector<2x32xf32> -> vector<2x32xf32>
    %176 = vector.extract_strided_slice %171 {offsets = [0, 0, 0], sizes = [1, 2, 32], strides = [1, 1, 1]} : vector<4x2x32xbf16> to vector<1x2x32xbf16>
    %177 = vector.shape_cast %176 : vector<1x2x32xbf16> to vector<2x32xbf16>
    %178 = arith.extf %177 : vector<2x32xbf16> to vector<2x32xf32>
    %179 = arith.addf %175, %178 : vector<2x32xf32>
    %c1_82 = arith.constant 1 : index
    %c0_83 = arith.constant 0 : index
    %c0_84 = arith.constant 0 : index
    %180 = vector.load %arg2[%c1_82, %c0_83, %c0_84] : memref<4x32x32xbf16, #tpu.memory_space<vmem>>, vector<1x32x32xbf16>
    %181 = vector.shape_cast %180 : vector<1x32x32xbf16> to vector<32x32xbf16>
    %cst_85 = arith.constant dense<0.000000e+00> : vector<2x32xf32>
    %182 = tpu.matmul %172, %181, %cst_85 {dimension_numbers = #tpu.dot_dimension_numbers<[1], [0], [0], [1], [0, 0, 1, 1], [], []>} : vector<2x32xbf16>, vector<32x32xbf16>, vector<2x32xf32> -> vector<2x32xf32>
    %183 = vector.extract_strided_slice %171 {offsets = [1, 0, 0], sizes = [1, 2, 32], strides = [1, 1, 1]} : vector<4x2x32xbf16> to vector<1x2x32xbf16>
    %184 = vector.shape_cast %183 : vector<1x2x32xbf16> to vector<2x32xbf16>
    %185 = arith.extf %184 : vector<2x32xbf16> to vector<2x32xf32>
    %186 = arith.addf %182, %185 : vector<2x32xf32>
    %c2_86 = arith.constant 2 : index
    %c0_87 = arith.constant 0 : index
    %c0_88 = arith.constant 0 : index
    %187 = vector.load %arg2[%c2_86, %c0_87, %c0_88] : memref<4x32x32xbf16, #tpu.memory_space<vmem>>, vector<1x32x32xbf16>
    %188 = vector.shape_cast %187 : vector<1x32x32xbf16> to vector<32x32xbf16>
    %cst_89 = arith.constant dense<0.000000e+00> : vector<2x32xf32>
    %189 = tpu.matmul %172, %188, %cst_89 {dimension_numbers = #tpu.dot_dimension_numbers<[1], [0], [0], [1], [0, 0, 1, 1], [], []>} : vector<2x32xbf16>, vector<32x32xbf16>, vector<2x32xf32> -> vector<2x32xf32>
    %190 = vector.extract_strided_slice %171 {offsets = [2, 0, 0], sizes = [1, 2, 32], strides = [1, 1, 1]} : vector<4x2x32xbf16> to vector<1x2x32xbf16>
    %191 = vector.shape_cast %190 : vector<1x2x32xbf16> to vector<2x32xbf16>
    %192 = arith.extf %191 : vector<2x32xbf16> to vector<2x32xf32>
    %193 = arith.addf %189, %192 : vector<2x32xf32>
    %c3_90 = arith.constant 3 : index
    %c0_91 = arith.constant 0 : index
    %c0_92 = arith.constant 0 : index
    %194 = vector.load %arg2[%c3_90, %c0_91, %c0_92] : memref<4x32x32xbf16, #tpu.memory_space<vmem>>, vector<1x32x32xbf16>
    %195 = vector.shape_cast %194 : vector<1x32x32xbf16> to vector<32x32xbf16>
    %cst_93 = arith.constant dense<0.000000e+00> : vector<2x32xf32>
    %196 = tpu.matmul %172, %195, %cst_93 {dimension_numbers = #tpu.dot_dimension_numbers<[1], [0], [0], [1], [0, 0, 1, 1], [], []>} : vector<2x32xbf16>, vector<32x32xbf16>, vector<2x32xf32> -> vector<2x32xf32>
    %197 = vector.extract_strided_slice %171 {offsets = [3, 0, 0], sizes = [1, 2, 32], strides = [1, 1, 1]} : vector<4x2x32xbf16> to vector<1x2x32xbf16>
    %198 = vector.shape_cast %197 : vector<1x2x32xbf16> to vector<2x32xbf16>
    %199 = arith.extf %198 : vector<2x32xbf16> to vector<2x32xf32>
    %200 = arith.addf %196, %199 : vector<2x32xf32>
    %201 = arith.negf %179 : vector<2x32xf32>
    %202 = math.exp %201 : vector<2x32xf32>
    %cst_94 = arith.constant 1.000000e+00 : f32
    %203 = vector.broadcast %cst_94 : f32 to vector<2x32xf32>
    %204 = arith.addf %203, %202 : vector<2x32xf32>
    %205 = arith.divf %203, %204 : vector<2x32xf32>
    %206 = arith.negf %186 : vector<2x32xf32>
    %207 = math.exp %206 : vector<2x32xf32>
    %cst_95 = arith.constant 1.000000e+00 : f32
    %208 = vector.broadcast %cst_95 : f32 to vector<2x32xf32>
    %209 = arith.addf %208, %207 : vector<2x32xf32>
    %210 = arith.divf %208, %209 : vector<2x32xf32>
    %211 = math.tanh %193 : vector<2x32xf32>
    %212 = arith.negf %200 : vector<2x32xf32>
    %213 = math.exp %212 : vector<2x32xf32>
    %cst_96 = arith.constant 1.000000e+00 : f32
    %214 = vector.broadcast %cst_96 : f32 to vector<2x32xf32>
    %215 = arith.addf %214, %213 : vector<2x32xf32>
    %216 = arith.divf %214, %215 : vector<2x32xf32>
    %217 = arith.mulf %210, %164 : vector<2x32xf32>
    %218 = arith.mulf %205, %211 : vector<2x32xf32>
    %219 = arith.addf %217, %218 : vector<2x32xf32>
    %220 = math.tanh %219 : vector<2x32xf32>
    %221 = arith.mulf %216, %220 : vector<2x32xf32>
    %c4_97 = arith.constant 4 : index
    %c0_98 = arith.constant 0 : index
    %c0_99 = arith.constant 0 : index
    %222 = vector.load %arg3[%c4_97, %c0_98, %c0_99] : memref<8x2x32xf32, #tpu.memory_space<vmem>>, vector<1x2x32xf32>
    %223 = vector.shape_cast %222 : vector<1x2x32xf32> to vector<2x32xf32>
    %224 = vector.shape_cast %221 : vector<2x32xf32> to vector<1x2x32xf32>
    tpu.vector_store %arg3[%c4_97, %c0_98, %c0_99], %224 {strides = array<i32>} : memref<8x2x32xf32, #tpu.memory_space<vmem>>, vector<1x2x32xf32>,
    %c3_100 = arith.constant 3 : index
    %c0_101 = arith.constant 0 : index
    %c0_102 = arith.constant 0 : index
    %c0_103 = arith.constant 0 : index
    %225 = vector.load %arg1[%c3_100, %c0_101, %c0_102, %c0_103] : memref<8x4x2x32xbf16, #tpu.memory_space<vmem>>, vector<1x4x2x32xbf16>
    %226 = vector.shape_cast %225 : vector<1x4x2x32xbf16> to vector<4x2x32xbf16>
    %227 = arith.truncf %221 : vector<2x32xf32> to vector<2x32xbf16>
    %c0_104 = arith.constant 0 : index
    %c0_105 = arith.constant 0 : index
    %c0_106 = arith.constant 0 : index
    %228 = vector.load %arg2[%c0_104, %c0_105, %c0_106] : memref<4x32x32xbf16, #tpu.memory_space<vmem>>, vector<1x32x32xbf16>
    %229 = vector.shape_cast %228 : vector<1x32x32xbf16> to vector<32x32xbf16>
    %cst_107 = arith.constant dense<0.000000e+00> : vector<2x32xf32>
    %230 = tpu.matmul %227, %229, %cst_107 {dimension_numbers = #tpu.dot_dimension_numbers<[1], [0], [0], [1], [0, 0, 1, 1], [], []>} : vector<2x32xbf16>, vector<32x32xbf16>, vector<2x32xf32> -> vector<2x32xf32>
    %231 = vector.extract_strided_slice %226 {offsets = [0, 0, 0], sizes = [1, 2, 32], strides = [1, 1, 1]} : vector<4x2x32xbf16> to vector<1x2x32xbf16>
    %232 = vector.shape_cast %231 : vector<1x2x32xbf16> to vector<2x32xbf16>
    %233 = arith.extf %232 : vector<2x32xbf16> to vector<2x32xf32>
    %234 = arith.addf %230, %233 : vector<2x32xf32>
    %c1_108 = arith.constant 1 : index
    %c0_109 = arith.constant 0 : index
    %c0_110 = arith.constant 0 : index
    %235 = vector.load %arg2[%c1_108, %c0_109, %c0_110] : memref<4x32x32xbf16, #tpu.memory_space<vmem>>, vector<1x32x32xbf16>
    %236 = vector.shape_cast %235 : vector<1x32x32xbf16> to vector<32x32xbf16>
    %cst_111 = arith.constant dense<0.000000e+00> : vector<2x32xf32>
    %237 = tpu.matmul %227, %236, %cst_111 {dimension_numbers = #tpu.dot_dimension_numbers<[1], [0], [0], [1], [0, 0, 1, 1], [], []>} : vector<2x32xbf16>, vector<32x32xbf16>, vector<2x32xf32> -> vector<2x32xf32>
    %238 = vector.extract_strided_slice %226 {offsets = [1, 0, 0], sizes = [1, 2, 32], strides = [1, 1, 1]} : vector<4x2x32xbf16> to vector<1x2x32xbf16>
    %239 = vector.shape_cast %238 : vector<1x2x32xbf16> to vector<2x32xbf16>
    %240 = arith.extf %239 : vector<2x32xbf16> to vector<2x32xf32>
    %241 = arith.addf %237, %240 : vector<2x32xf32>
    %c2_112 = arith.constant 2 : index
    %c0_113 = arith.constant 0 : index
    %c0_114 = arith.constant 0 : index
    %242 = vector.load %arg2[%c2_112, %c0_113, %c0_114] : memref<4x32x32xbf16, #tpu.memory_space<vmem>>, vector<1x32x32xbf16>
    %243 = vector.shape_cast %242 : vector<1x32x32xbf16> to vector<32x32xbf16>
    %cst_115 = arith.constant dense<0.000000e+00> : vector<2x32xf32>
    %244 = tpu.matmul %227, %243, %cst_115 {dimension_numbers = #tpu.dot_dimension_numbers<[1], [0], [0], [1], [0, 0, 1, 1], [], []>} : vector<2x32xbf16>, vector<32x32xbf16>, vector<2x32xf32> -> vector<2x32xf32>
    %245 = vector.extract_strided_slice %226 {offsets = [2, 0, 0], sizes = [1, 2, 32], strides = [1, 1, 1]} : vector<4x2x32xbf16> to vector<1x2x32xbf16>
    %246 = vector.shape_cast %245 : vector<1x2x32xbf16> to vector<2x32xbf16>
    %247 = arith.extf %246 : vector<2x32xbf16> to vector<2x32xf32>
    %248 = arith.addf %244, %247 : vector<2x32xf32>
    %c3_116 = arith.constant 3 : index
    %c0_117 = arith.constant 0 : index
    %c0_118 = arith.constant 0 : index
    %249 = vector.load %arg2[%c3_116, %c0_117, %c0_118] : memref<4x32x32xbf16, #tpu.memory_space<vmem>>, vector<1x32x32xbf16>
    %250 = vector.shape_cast %249 : vector<1x32x32xbf16> to vector<32x32xbf16>
    %cst_119 = arith.constant dense<0.000000e+00> : vector<2x32xf32>
    %251 = tpu.matmul %227, %250, %cst_119 {dimension_numbers = #tpu.dot_dimension_numbers<[1], [0], [0], [1], [0, 0, 1, 1], [], []>} : vector<2x32xbf16>, vector<32x32xbf16>, vector<2x32xf32> -> vector<2x32xf32>
    %252 = vector.extract_strided_slice %226 {offsets = [3, 0, 0], sizes = [1, 2, 32], strides = [1, 1, 1]} : vector<4x2x32xbf16> to vector<1x2x32xbf16>
    %253 = vector.shape_cast %252 : vector<1x2x32xbf16> to vector<2x32xbf16>
    %254 = arith.extf %253 : vector<2x32xbf16> to vector<2x32xf32>
    %255 = arith.addf %251, %254 : vector<2x32xf32>
    %256 = arith.negf %234 : vector<2x32xf32>
    %257 = math.exp %256 : vector<2x32xf32>
    %cst_120 = arith.constant 1.000000e+00 : f32
    %258 = vector.broadcast %cst_120 : f32 to vector<2x32xf32>
    %259 = arith.addf %258, %257 : vector<2x32xf32>
    %260 = arith.divf %258, %259 : vector<2x32xf32>
    %261 = arith.negf %241 : vector<2x32xf32>
    %262 = math.exp %261 : vector<2x32xf32>
    %cst_121 = arith.constant 1.000000e+00 : f32
    %263 = vector.broadcast %cst_121 : f32 to vector<2x32xf32>
    %264 = arith.addf %263, %262 : vector<2x32xf32>
    %265 = arith.divf %263, %264 : vector<2x32xf32>
    %266 = math.tanh %248 : vector<2x32xf32>
    %267 = arith.negf %255 : vector<2x32xf32>
    %268 = math.exp %267 : vector<2x32xf32>
    %cst_122 = arith.constant 1.000000e+00 : f32
    %269 = vector.broadcast %cst_122 : f32 to vector<2x32xf32>
    %270 = arith.addf %269, %268 : vector<2x32xf32>
    %271 = arith.divf %269, %270 : vector<2x32xf32>
    %272 = arith.mulf %265, %219 : vector<2x32xf32>
    %273 = arith.mulf %260, %266 : vector<2x32xf32>
    %274 = arith.addf %272, %273 : vector<2x32xf32>
    %275 = math.tanh %274 : vector<2x32xf32>
    %276 = arith.mulf %271, %275 : vector<2x32xf32>
    %c3_123 = arith.constant 3 : index
    %c0_124 = arith.constant 0 : index
    %c0_125 = arith.constant 0 : index
    %277 = vector.load %arg3[%c3_123, %c0_124, %c0_125] : memref<8x2x32xf32, #tpu.memory_space<vmem>>, vector<1x2x32xf32>
    %278 = vector.shape_cast %277 : vector<1x2x32xf32> to vector<2x32xf32>
    %279 = vector.shape_cast %276 : vector<2x32xf32> to vector<1x2x32xf32>
    tpu.vector_store %arg3[%c3_123, %c0_124, %c0_125], %279 {strides = array<i32>} : memref<8x2x32xf32, #tpu.memory_space<vmem>>, vector<1x2x32xf32>,
    %c2_126 = arith.constant 2 : index
    %c0_127 = arith.constant 0 : index
    %c0_128 = arith.constant 0 : index
    %c0_129 = arith.constant 0 : index
    %280 = vector.load %arg1[%c2_126, %c0_127, %c0_128, %c0_129] : memref<8x4x2x32xbf16, #tpu.memory_space<vmem>>, vector<1x4x2x32xbf16>
    %281 = vector.shape_cast %280 : vector<1x4x2x32xbf16> to vector<4x2x32xbf16>
    %282 = arith.truncf %276 : vector<2x32xf32> to vector<2x32xbf16>
    %c0_130 = arith.constant 0 : index
    %c0_131 = arith.constant 0 : index
    %c0_132 = arith.constant 0 : index
    %283 = vector.load %arg2[%c0_130, %c0_131, %c0_132] : memref<4x32x32xbf16, #tpu.memory_space<vmem>>, vector<1x32x32xbf16>
    %284 = vector.shape_cast %283 : vector<1x32x32xbf16> to vector<32x32xbf16>
    %cst_133 = arith.constant dense<0.000000e+00> : vector<2x32xf32>
    %285 = tpu.matmul %282, %284, %cst_133 {dimension_numbers = #tpu.dot_dimension_numbers<[1], [0], [0], [1], [0, 0, 1, 1], [], []>} : vector<2x32xbf16>, vector<32x32xbf16>, vector<2x32xf32> -> vector<2x32xf32>
    %286 = vector.extract_strided_slice %281 {offsets = [0, 0, 0], sizes = [1, 2, 32], strides = [1, 1, 1]} : vector<4x2x32xbf16> to vector<1x2x32xbf16>
    %287 = vector.shape_cast %286 : vector<1x2x32xbf16> to vector<2x32xbf16>
    %288 = arith.extf %287 : vector<2x32xbf16> to vector<2x32xf32>
    %289 = arith.addf %285, %288 : vector<2x32xf32>
    %c1_134 = arith.constant 1 : index
    %c0_135 = arith.constant 0 : index
    %c0_136 = arith.constant 0 : index
    %290 = vector.load %arg2[%c1_134, %c0_135, %c0_136] : memref<4x32x32xbf16, #tpu.memory_space<vmem>>, vector<1x32x32xbf16>
    %291 = vector.shape_cast %290 : vector<1x32x32xbf16> to vector<32x32xbf16>
    %cst_137 = arith.constant dense<0.000000e+00> : vector<2x32xf32>
    %292 = tpu.matmul %282, %291, %cst_137 {dimension_numbers = #tpu.dot_dimension_numbers<[1], [0], [0], [1], [0, 0, 1, 1], [], []>} : vector<2x32xbf16>, vector<32x32xbf16>, vector<2x32xf32> -> vector<2x32xf32>
    %293 = vector.extract_strided_slice %281 {offsets = [1, 0, 0], sizes = [1, 2, 32], strides = [1, 1, 1]} : vector<4x2x32xbf16> to vector<1x2x32xbf16>
    %294 = vector.shape_cast %293 : vector<1x2x32xbf16> to vector<2x32xbf16>
    %295 = arith.extf %294 : vector<2x32xbf16> to vector<2x32xf32>
    %296 = arith.addf %292, %295 : vector<2x32xf32>
    %c2_138 = arith.constant 2 : index
    %c0_139 = arith.constant 0 : index
    %c0_140 = arith.constant 0 : index
    %297 = vector.load %arg2[%c2_138, %c0_139, %c0_140] : memref<4x32x32xbf16, #tpu.memory_space<vmem>>, vector<1x32x32xbf16>
    %298 = vector.shape_cast %297 : vector<1x32x32xbf16> to vector<32x32xbf16>
    %cst_141 = arith.constant dense<0.000000e+00> : vector<2x32xf32>
    %299 = tpu.matmul %282, %298, %cst_141 {dimension_numbers = #tpu.dot_dimension_numbers<[1], [0], [0], [1], [0, 0, 1, 1], [], []>} : vector<2x32xbf16>, vector<32x32xbf16>, vector<2x32xf32> -> vector<2x32xf32>
    %300 = vector.extract_strided_slice %281 {offsets = [2, 0, 0], sizes = [1, 2, 32], strides = [1, 1, 1]} : vector<4x2x32xbf16> to vector<1x2x32xbf16>
    %301 = vector.shape_cast %300 : vector<1x2x32xbf16> to vector<2x32xbf16>
    %302 = arith.extf %301 : vector<2x32xbf16> to vector<2x32xf32>
    %303 = arith.addf %299, %302 : vector<2x32xf32>
    %c3_142 = arith.constant 3 : index
    %c0_143 = arith.constant 0 : index
    %c0_144 = arith.constant 0 : index
    %304 = vector.load %arg2[%c3_142, %c0_143, %c0_144] : memref<4x32x32xbf16, #tpu.memory_space<vmem>>, vector<1x32x32xbf16>
    %305 = vector.shape_cast %304 : vector<1x32x32xbf16> to vector<32x32xbf16>
    %cst_145 = arith.constant dense<0.000000e+00> : vector<2x32xf32>
    %306 = tpu.matmul %282, %305, %cst_145 {dimension_numbers = #tpu.dot_dimension_numbers<[1], [0], [0], [1], [0, 0, 1, 1], [], []>} : vector<2x32xbf16>, vector<32x32xbf16>, vector<2x32xf32> -> vector<2x32xf32>
    %307 = vector.extract_strided_slice %281 {offsets = [3, 0, 0], sizes = [1, 2, 32], strides = [1, 1, 1]} : vector<4x2x32xbf16> to vector<1x2x32xbf16>
    %308 = vector.shape_cast %307 : vector<1x2x32xbf16> to vector<2x32xbf16>
    %309 = arith.extf %308 : vector<2x32xbf16> to vector<2x32xf32>
    %310 = arith.addf %306, %309 : vector<2x32xf32>
    %311 = arith.negf %289 : vector<2x32xf32>
    %312 = math.exp %311 : vector<2x32xf32>
    %cst_146 = arith.constant 1.000000e+00 : f32
    %313 = vector.broadcast %cst_146 : f32 to vector<2x32xf32>
    %314 = arith.addf %313, %312 : vector<2x32xf32>
    %315 = arith.divf %313, %314 : vector<2x32xf32>
    %316 = arith.negf %296 : vector<2x32xf32>
    %317 = math.exp %316 : vector<2x32xf32>
    %cst_147 = arith.constant 1.000000e+00 : f32
    %318 = vector.broadcast %cst_147 : f32 to vector<2x32xf32>
    %319 = arith.addf %318, %317 : vector<2x32xf32>
    %320 = arith.divf %318, %319 : vector<2x32xf32>
    %321 = math.tanh %303 : vector<2x32xf32>
    %322 = arith.negf %310 : vector<2x32xf32>
    %323 = math.exp %322 : vector<2x32xf32>
    %cst_148 = arith.constant 1.000000e+00 : f32
    %324 = vector.broadcast %cst_148 : f32 to vector<2x32xf32>
    %325 = arith.addf %324, %323 : vector<2x32xf32>
    %326 = arith.divf %324, %325 : vector<2x32xf32>
    %327 = arith.mulf %320, %274 : vector<2x32xf32>
    %328 = arith.mulf %315, %321 : vector<2x32xf32>
    %329 = arith.addf %327, %328 : vector<2x32xf32>
    %330 = math.tanh %329 : vector<2x32xf32>
    %331 = arith.mulf %326, %330 : vector<2x32xf32>
    %c2_149 = arith.constant 2 : index
    %c0_150 = arith.constant 0 : index
    %c0_151 = arith.constant 0 : index
    %332 = vector.load %arg3[%c2_149, %c0_150, %c0_151] : memref<8x2x32xf32, #tpu.memory_space<vmem>>, vector<1x2x32xf32>
    %333 = vector.shape_cast %332 : vector<1x2x32xf32> to vector<2x32xf32>
    %334 = vector.shape_cast %331 : vector<2x32xf32> to vector<1x2x32xf32>
    tpu.vector_store %arg3[%c2_149, %c0_150, %c0_151], %334 {strides = array<i32>} : memref<8x2x32xf32, #tpu.memory_space<vmem>>, vector<1x2x32xf32>,
    %c1_152 = arith.constant 1 : index
    %c0_153 = arith.constant 0 : index
    %c0_154 = arith.constant 0 : index
    %c0_155 = arith.constant 0 : index
    %335 = vector.load %arg1[%c1_152, %c0_153, %c0_154, %c0_155] : memref<8x4x2x32xbf16, #tpu.memory_space<vmem>>, vector<1x4x2x32xbf16>
    %336 = vector.shape_cast %335 : vector<1x4x2x32xbf16> to vector<4x2x32xbf16>
    %337 = arith.truncf %331 : vector<2x32xf32> to vector<2x32xbf16>
    %c0_156 = arith.constant 0 : index
    %c0_157 = arith.constant 0 : index
    %c0_158 = arith.constant 0 : index
    %338 = vector.load %arg2[%c0_156, %c0_157, %c0_158] : memref<4x32x32xbf16, #tpu.memory_space<vmem>>, vector<1x32x32xbf16>
    %339 = vector.shape_cast %338 : vector<1x32x32xbf16> to vector<32x32xbf16>
    %cst_159 = arith.constant dense<0.000000e+00> : vector<2x32xf32>
    %340 = tpu.matmul %337, %339, %cst_159 {dimension_numbers = #tpu.dot_dimension_numbers<[1], [0], [0], [1], [0, 0, 1, 1], [], []>} : vector<2x32xbf16>, vector<32x32xbf16>, vector<2x32xf32> -> vector<2x32xf32>
    %341 = vector.extract_strided_slice %336 {offsets = [0, 0, 0], sizes = [1, 2, 32], strides = [1, 1, 1]} : vector<4x2x32xbf16> to vector<1x2x32xbf16>
    %342 = vector.shape_cast %341 : vector<1x2x32xbf16> to vector<2x32xbf16>
    %343 = arith.extf %342 : vector<2x32xbf16> to vector<2x32xf32>
    %344 = arith.addf %340, %343 : vector<2x32xf32>
    %c1_160 = arith.constant 1 : index
    %c0_161 = arith.constant 0 : index
    %c0_162 = arith.constant 0 : index
    %345 = vector.load %arg2[%c1_160, %c0_161, %c0_162] : memref<4x32x32xbf16, #tpu.memory_space<vmem>>, vector<1x32x32xbf16>
    %346 = vector.shape_cast %345 : vector<1x32x32xbf16> to vector<32x32xbf16>
    %cst_163 = arith.constant dense<0.000000e+00> : vector<2x32xf32>
    %347 = tpu.matmul %337, %346, %cst_163 {dimension_numbers = #tpu.dot_dimension_numbers<[1], [0], [0], [1], [0, 0, 1, 1], [], []>} : vector<2x32xbf16>, vector<32x32xbf16>, vector<2x32xf32> -> vector<2x32xf32>
    %348 = vector.extract_strided_slice %336 {offsets = [1, 0, 0], sizes = [1, 2, 32], strides = [1, 1, 1]} : vector<4x2x32xbf16> to vector<1x2x32xbf16>
    %349 = vector.shape_cast %348 : vector<1x2x32xbf16> to vector<2x32xbf16>
    %350 = arith.extf %349 : vector<2x32xbf16> to vector<2x32xf32>
    %351 = arith.addf %347, %350 : vector<2x32xf32>
    %c2_164 = arith.constant 2 : index
    %c0_165 = arith.constant 0 : index
    %c0_166 = arith.constant 0 : index
    %352 = vector.load %arg2[%c2_164, %c0_165, %c0_166] : memref<4x32x32xbf16, #tpu.memory_space<vmem>>, vector<1x32x32xbf16>
    %353 = vector.shape_cast %352 : vector<1x32x32xbf16> to vector<32x32xbf16>
    %cst_167 = arith.constant dense<0.000000e+00> : vector<2x32xf32>
    %354 = tpu.matmul %337, %353, %cst_167 {dimension_numbers = #tpu.dot_dimension_numbers<[1], [0], [0], [1], [0, 0, 1, 1], [], []>} : vector<2x32xbf16>, vector<32x32xbf16>, vector<2x32xf32> -> vector<2x32xf32>
    %355 = vector.extract_strided_slice %336 {offsets = [2, 0, 0], sizes = [1, 2, 32], strides = [1, 1, 1]} : vector<4x2x32xbf16> to vector<1x2x32xbf16>
    %356 = vector.shape_cast %355 : vector<1x2x32xbf16> to vector<2x32xbf16>
    %357 = arith.extf %356 : vector<2x32xbf16> to vector<2x32xf32>
    %358 = arith.addf %354, %357 : vector<2x32xf32>
    %c3_168 = arith.constant 3 : index
    %c0_169 = arith.constant 0 : index
    %c0_170 = arith.constant 0 : index
    %359 = vector.load %arg2[%c3_168, %c0_169, %c0_170] : memref<4x32x32xbf16, #tpu.memory_space<vmem>>, vector<1x32x32xbf16>
    %360 = vector.shape_cast %359 : vector<1x32x32xbf16> to vector<32x32xbf16>
    %cst_171 = arith.constant dense<0.000000e+00> : vector<2x32xf32>
    %361 = tpu.matmul %337, %360, %cst_171 {dimension_numbers = #tpu.dot_dimension_numbers<[1], [0], [0], [1], [0, 0, 1, 1], [], []>} : vector<2x32xbf16>, vector<32x32xbf16>, vector<2x32xf32> -> vector<2x32xf32>
    %362 = vector.extract_strided_slice %336 {offsets = [3, 0, 0], sizes = [1, 2, 32], strides = [1, 1, 1]} : vector<4x2x32xbf16> to vector<1x2x32xbf16>
    %363 = vector.shape_cast %362 : vector<1x2x32xbf16> to vector<2x32xbf16>
    %364 = arith.extf %363 : vector<2x32xbf16> to vector<2x32xf32>
    %365 = arith.addf %361, %364 : vector<2x32xf32>
    %366 = arith.negf %344 : vector<2x32xf32>
    %367 = math.exp %366 : vector<2x32xf32>
    %cst_172 = arith.constant 1.000000e+00 : f32
    %368 = vector.broadcast %cst_172 : f32 to vector<2x32xf32>
    %369 = arith.addf %368, %367 : vector<2x32xf32>
    %370 = arith.divf %368, %369 : vector<2x32xf32>
    %371 = arith.negf %351 : vector<2x32xf32>
    %372 = math.exp %371 : vector<2x32xf32>
    %cst_173 = arith.constant 1.000000e+00 : f32
    %373 = vector.broadcast %cst_173 : f32 to vector<2x32xf32>
    %374 = arith.addf %373, %372 : vector<2x32xf32>
    %375 = arith.divf %373, %374 : vector<2x32xf32>
    %376 = math.tanh %358 : vector<2x32xf32>
    %377 = arith.negf %365 : vector<2x32xf32>
    %378 = math.exp %377 : vector<2x32xf32>
    %cst_174 = arith.constant 1.000000e+00 : f32
    %379 = vector.broadcast %cst_174 : f32 to vector<2x32xf32>
    %380 = arith.addf %379, %378 : vector<2x32xf32>
    %381 = arith.divf %379, %380 : vector<2x32xf32>
    %382 = arith.mulf %375, %329 : vector<2x32xf32>
    %383 = arith.mulf %370, %376 : vector<2x32xf32>
    %384 = arith.addf %382, %383 : vector<2x32xf32>
    %385 = math.tanh %384 : vector<2x32xf32>
    %386 = arith.mulf %381, %385 : vector<2x32xf32>
    %c1_175 = arith.constant 1 : index
    %c0_176 = arith.constant 0 : index
    %c0_177 = arith.constant 0 : index
    %387 = vector.load %arg3[%c1_175, %c0_176, %c0_177] : memref<8x2x32xf32, #tpu.memory_space<vmem>>, vector<1x2x32xf32>
    %388 = vector.shape_cast %387 : vector<1x2x32xf32> to vector<2x32xf32>
    %389 = vector.shape_cast %386 : vector<2x32xf32> to vector<1x2x32xf32>
    tpu.vector_store %arg3[%c1_175, %c0_176, %c0_177], %389 {strides = array<i32>} : memref<8x2x32xf32, #tpu.memory_space<vmem>>, vector<1x2x32xf32>,
    %c0_178 = arith.constant 0 : index
    %c0_179 = arith.constant 0 : index
    %c0_180 = arith.constant 0 : index
    %c0_181 = arith.constant 0 : index
    %390 = vector.load %arg1[%c0_178, %c0_179, %c0_180, %c0_181] : memref<8x4x2x32xbf16, #tpu.memory_space<vmem>>, vector<1x4x2x32xbf16>
    %391 = vector.shape_cast %390 : vector<1x4x2x32xbf16> to vector<4x2x32xbf16>
    %392 = arith.truncf %386 : vector<2x32xf32> to vector<2x32xbf16>
    %c0_182 = arith.constant 0 : index
    %c0_183 = arith.constant 0 : index
    %c0_184 = arith.constant 0 : index
    %393 = vector.load %arg2[%c0_182, %c0_183, %c0_184] : memref<4x32x32xbf16, #tpu.memory_space<vmem>>, vector<1x32x32xbf16>
    %394 = vector.shape_cast %393 : vector<1x32x32xbf16> to vector<32x32xbf16>
    %cst_185 = arith.constant dense<0.000000e+00> : vector<2x32xf32>
    %395 = tpu.matmul %392, %394, %cst_185 {dimension_numbers = #tpu.dot_dimension_numbers<[1], [0], [0], [1], [0, 0, 1, 1], [], []>} : vector<2x32xbf16>, vector<32x32xbf16>, vector<2x32xf32> -> vector<2x32xf32>
    %396 = vector.extract_strided_slice %391 {offsets = [0, 0, 0], sizes = [1, 2, 32], strides = [1, 1, 1]} : vector<4x2x32xbf16> to vector<1x2x32xbf16>
    %397 = vector.shape_cast %396 : vector<1x2x32xbf16> to vector<2x32xbf16>
    %398 = arith.extf %397 : vector<2x32xbf16> to vector<2x32xf32>
    %399 = arith.addf %395, %398 : vector<2x32xf32>
    %c1_186 = arith.constant 1 : index
    %c0_187 = arith.constant 0 : index
    %c0_188 = arith.constant 0 : index
    %400 = vector.load %arg2[%c1_186, %c0_187, %c0_188] : memref<4x32x32xbf16, #tpu.memory_space<vmem>>, vector<1x32x32xbf16>
    %401 = vector.shape_cast %400 : vector<1x32x32xbf16> to vector<32x32xbf16>
    %cst_189 = arith.constant dense<0.000000e+00> : vector<2x32xf32>
    %402 = tpu.matmul %392, %401, %cst_189 {dimension_numbers = #tpu.dot_dimension_numbers<[1], [0], [0], [1], [0, 0, 1, 1], [], []>} : vector<2x32xbf16>, vector<32x32xbf16>, vector<2x32xf32> -> vector<2x32xf32>
    %403 = vector.extract_strided_slice %391 {offsets = [1, 0, 0], sizes = [1, 2, 32], strides = [1, 1, 1]} : vector<4x2x32xbf16> to vector<1x2x32xbf16>
    %404 = vector.shape_cast %403 : vector<1x2x32xbf16> to vector<2x32xbf16>
    %405 = arith.extf %404 : vector<2x32xbf16> to vector<2x32xf32>
    %406 = arith.addf %402, %405 : vector<2x32xf32>
    %c2_190 = arith.constant 2 : index
    %c0_191 = arith.constant 0 : index
    %c0_192 = arith.constant 0 : index
    %407 = vector.load %arg2[%c2_190, %c0_191, %c0_192] : memref<4x32x32xbf16, #tpu.memory_space<vmem>>, vector<1x32x32xbf16>
    %408 = vector.shape_cast %407 : vector<1x32x32xbf16> to vector<32x32xbf16>
    %cst_193 = arith.constant dense<0.000000e+00> : vector<2x32xf32>
    %409 = tpu.matmul %392, %408, %cst_193 {dimension_numbers = #tpu.dot_dimension_numbers<[1], [0], [0], [1], [0, 0, 1, 1], [], []>} : vector<2x32xbf16>, vector<32x32xbf16>, vector<2x32xf32> -> vector<2x32xf32>
    %410 = vector.extract_strided_slice %391 {offsets = [2, 0, 0], sizes = [1, 2, 32], strides = [1, 1, 1]} : vector<4x2x32xbf16> to vector<1x2x32xbf16>
    %411 = vector.shape_cast %410 : vector<1x2x32xbf16> to vector<2x32xbf16>
    %412 = arith.extf %411 : vector<2x32xbf16> to vector<2x32xf32>
    %413 = arith.addf %409, %412 : vector<2x32xf32>
    %c3_194 = arith.constant 3 : index
    %c0_195 = arith.constant 0 : index
    %c0_196 = arith.constant 0 : index
    %414 = vector.load %arg2[%c3_194, %c0_195, %c0_196] : memref<4x32x32xbf16, #tpu.memory_space<vmem>>, vector<1x32x32xbf16>
    %415 = vector.shape_cast %414 : vector<1x32x32xbf16> to vector<32x32xbf16>
    %cst_197 = arith.constant dense<0.000000e+00> : vector<2x32xf32>
    %416 = tpu.matmul %392, %415, %cst_197 {dimension_numbers = #tpu.dot_dimension_numbers<[1], [0], [0], [1], [0, 0, 1, 1], [], []>} : vector<2x32xbf16>, vector<32x32xbf16>, vector<2x32xf32> -> vector<2x32xf32>
    %417 = vector.extract_strided_slice %391 {offsets = [3, 0, 0], sizes = [1, 2, 32], strides = [1, 1, 1]} : vector<4x2x32xbf16> to vector<1x2x32xbf16>
    %418 = vector.shape_cast %417 : vector<1x2x32xbf16> to vector<2x32xbf16>
    %419 = arith.extf %418 : vector<2x32xbf16> to vector<2x32xf32>
    %420 = arith.addf %416, %419 : vector<2x32xf32>
    %421 = arith.negf %399 : vector<2x32xf32>
    %422 = math.exp %421 : vector<2x32xf32>
    %cst_198 = arith.constant 1.000000e+00 : f32
    %423 = vector.broadcast %cst_198 : f32 to vector<2x32xf32>
    %424 = arith.addf %423, %422 : vector<2x32xf32>
    %425 = arith.divf %423, %424 : vector<2x32xf32>
    %426 = arith.negf %406 : vector<2x32xf32>
    %427 = math.exp %426 : vector<2x32xf32>
    %cst_199 = arith.constant 1.000000e+00 : f32
    %428 = vector.broadcast %cst_199 : f32 to vector<2x32xf32>
    %429 = arith.addf %428, %427 : vector<2x32xf32>
    %430 = arith.divf %428, %429 : vector<2x32xf32>
    %431 = math.tanh %413 : vector<2x32xf32>
    %432 = arith.negf %420 : vector<2x32xf32>
    %433 = math.exp %432 : vector<2x32xf32>
    %cst_200 = arith.constant 1.000000e+00 : f32
    %434 = vector.broadcast %cst_200 : f32 to vector<2x32xf32>
    %435 = arith.addf %434, %433 : vector<2x32xf32>
    %436 = arith.divf %434, %435 : vector<2x32xf32>
    %437 = arith.mulf %430, %384 : vector<2x32xf32>
    %438 = arith.mulf %425, %431 : vector<2x32xf32>
    %439 = arith.addf %437, %438 : vector<2x32xf32>
    %440 = math.tanh %439 : vector<2x32xf32>
    %441 = arith.mulf %436, %440 : vector<2x32xf32>
    %c0_201 = arith.constant 0 : index
    %c0_202 = arith.constant 0 : index
    %c0_203 = arith.constant 0 : index
    %442 = vector.load %arg3[%c0_201, %c0_202, %c0_203] : memref<8x2x32xf32, #tpu.memory_space<vmem>>, vector<1x2x32xf32>
    %443 = vector.shape_cast %442 : vector<1x2x32xf32> to vector<2x32xf32>
    %444 = vector.shape_cast %441 : vector<2x32xf32> to vector<1x2x32xf32>
    tpu.vector_store %arg3[%c0_201, %c0_202, %c0_203], %444 {strides = array<i32>} : memref<8x2x32xf32, #tpu.memory_space<vmem>>, vector<1x2x32xf32>,
    %c0_204 = arith.constant 0 : index
    %c0_205 = arith.constant 0 : index
    %445 = vector.load %arg6[%c0_204, %c0_205] : memref<2x32xf32, #tpu.memory_space<vmem>>, vector<2x32xf32>
    tpu.vector_store %arg6[%c0_204, %c0_205], %441 {strides = array<i32>} : memref<2x32xf32, #tpu.memory_space<vmem>>, vector<2x32xf32>,
    %c0_206 = arith.constant 0 : index
    %c0_207 = arith.constant 0 : index
    %446 = vector.load %arg7[%c0_206, %c0_207] : memref<2x32xf32, #tpu.memory_space<vmem>>, vector<2x32xf32>
    tpu.vector_store %arg7[%c0_206, %c0_207], %439 {strides = array<i32>} : memref<2x32xf32, #tpu.memory_space<vmem>>, vector<2x32xf32>,
    %c0_i32_208 = arith.constant 0 : i32
    %447 = arith.cmpi eq, %arg0, %c0_i32_208 : i32
    %448 = arith.extui %447 : i1 to i32
    %c0_i32_209 = arith.constant 0 : i32
    %449 = arith.cmpi ne, %448, %c0_i32_209 : i32
    scf.if %449 {
      %c0_210 = arith.constant 0 : index
      %c0_211 = arith.constant 0 : index
      %450 = vector.load %arg4[%c0_210, %c0_211] : memref<2x32xf32, #tpu.memory_space<vmem>>, vector<2x32xf32>
      tpu.vector_store %arg4[%c0_210, %c0_211], %441 {strides = array<i32>} : memref<2x32xf32, #tpu.memory_space<vmem>>, vector<2x32xf32>,
      %c0_212 = arith.constant 0 : index
      %c0_213 = arith.constant 0 : index
      %451 = vector.load %arg5[%c0_212, %c0_213] : memref<2x32xf32, #tpu.memory_space<vmem>>, vector<2x32xf32>
      tpu.vector_store %arg5[%c0_212, %c0_213], %439 {strides = array<i32>} : memref<2x32xf32, #tpu.memory_space<vmem>>, vector<2x32xf32>,
    } else {
    }
    return
  }
  func.func @transform_0(%arg0: i32) -> (i32, i32, i32, i32) {
    %c0_i32 = arith.constant 0 : i32
    %0 = arith.subi %c0_i32, %arg0 : i32
    %c0_i32_0 = arith.constant 0 : i32
    %c0_i32_1 = arith.constant 0 : i32
    %c0_i32_2 = arith.constant 0 : i32
    %c0_i32_3 = arith.constant 0 : i32
    return %0, %c0_i32_0, %c0_i32_1, %c0_i32_2 : i32, i32, i32, i32
  }
  func.func @transform_1(%arg0: i32) -> (i32, i32, i32) {
    %c0_i32 = arith.constant 0 : i32
    %c0_i32_0 = arith.constant 0 : i32
    %c0_i32_1 = arith.constant 0 : i32
    %c0_i32_2 = arith.constant 0 : i32
    return %c0_i32, %c0_i32_0, %c0_i32_1 : i32, i32, i32
  }
  func.func @transform_2(%arg0: i32) -> (i32, i32, i32) {
    %c0_i32 = arith.constant 0 : i32
    %0 = arith.subi %c0_i32, %arg0 : i32
    %c0_i32_0 = arith.constant 0 : i32
    %c0_i32_1 = arith.constant 0 : i32
    %c0_i32_2 = arith.constant 0 : i32
    return %0, %c0_i32_0, %c0_i32_1 : i32, i32, i32
  }
  func.func @transform_3(%arg0: i32) -> (i32, i32) {
    %c0_i32 = arith.constant 0 : i32
    %c0_i32_0 = arith.constant 0 : i32
    %c0_i32_1 = arith.constant 0 : i32
    return %c0_i32, %c0_i32_0 : i32, i32
  }
  func.func @transform_4(%arg0: i32) -> (i32, i32) {
    %c0_i32 = arith.constant 0 : i32
    %c0_i32_0 = arith.constant 0 : i32
    %c0_i32_1 = arith.constant 0 : i32
    return %c0_i32, %c0_i32_0 : i32, i32
  }
}

</mosaic_0001>

<bundles_post_ra>
// kernel: encoder_forward.4
= control target key start
LH: loop header
LB: loop body
LE: loop exit
PB: predicated region body
PF: predicated region fallthrough
CT: control target
= control target key end

     0   :  { %vm55_vm0 = vcmask 254976   ;;  %v3011_v0 = vmov 0.0   ;;  %vm3012_vm1 = vmmov 0   ;;  %vm83_vm2 = vcmask 261120   ;;  %s3560_s1 = inlined_call_operand.vmem [shape: bf16[4,32,32], index: 1, kind: input, shape index: {}]   ;;  %s3561_s0 = inlined_call_operand.vmem [shape: bf16[8,4,2,32], index: 0, kind: input, shape index: {}]   ;;  %s3562_s2 = inlined_call_operand.vmem [shape: f32[8,2,32], index: 2, kind: output, shape index: {0}]   ;;  %s3563_s4 = inlined_call_operand.vmem [shape: f32[2,32], index: 4, kind: output, shape index: {2}]   ;;  %s3564_s3 = inlined_call_operand.vmem [shape: f32[2,32], index: 3, kind: output, shape index: {1}]  }
   0x1   :  { %2561 = vmatprep.subr.bf16.mxu0 %v3011_v0  ;;  %2569 = vmatprep.subr.bf16.mxu1 %v3011_v0  ;;  %v2819_v1 = vld [vmem:[%s3560_s1] sm:$0xff]   ;;  %56 = vst.msk [vmem:[#allocation2] sm:$0x3] %vm55_vm0, %v3011_v0  ;;  %57 = vst.msk [vmem:[#allocation3] sm:$0x3] %vm55_vm0, %v3011_v0  ;;  %v2820_v2 = vld [vmem:[%s3560_s1 + $0x10] sm:$0xff]  }
   0x2   :  { %2565 = vmatprep.mubr.msk.bf16.mxu0 %vm3012_vm1, %v3011_v0  ;;  %2573 = vmatprep.mubr.msk.bf16.mxu1 %vm3012_vm1, %v3011_v0  ;;  %v2821_v3 = vld [vmem:[%s3560_s1 + $0x8] sm:$0xff]   ;;  %v2822_v4 = vld [vmem:[%s3560_s1 + $0x18] sm:$0xff]   ;;  %v2823_v5 = vld [vmem:[%s3560_s1 + $0x20] sm:$0xff]  }
   0x3   :  { %2562 = vmatpush3.bf16.msra.mxu0 %v2819_v1  ;;  %2570 = vmatpush3.bf16.msra.mxu1 %v2820_v2  ;;  %v2824_v6 = vld [vmem:[%s3560_s1 + $0x30] sm:$0xff]   ;;  %v2825_v9 = vld [vmem:[%s3560_s1 + $0x28] sm:$0xff]   ;;  %v2826_v10 = vld [vmem:[%s3560_s1 + $0x38] sm:$0xff]  }
   0x4   :  { %2563 = vmatprep.subr.bf16.mxu0 %v3011_v0  ;;  %2571 = vmatprep.subr.bf16.mxu1 %v3011_v0  ;;  %v2827_v11 = vld [vmem:[%s3560_s1] sm:$0xff]   ;;  %v2828_v12 = vld [vmem:[%s3560_s1 + $0x10] sm:$0xff]   ;;  %v2829_v13 = vld [vmem:[%s3560_s1 + $0x8] sm:$0xff]  }
   0x5   :  { %v2830_v14 = vld [vmem:[%s3560_s1 + $0x18] sm:$0xff]   ;;  %v2831_v62 = vld [vmem:[%s3560_s1 + $0x20] sm:$0xff]   ;;  %v2832_v63 = vld [vmem:[%s3560_s1 + $0x30] sm:$0xff]  }
   0x6   :  { %v2214_v15 = vld [vmem:[%s3561_s0 + $0x1c] sm:$0x1]  ;;  %v2215_v16 = vld [vmem:[%s3561_s0 + $0x1d] sm:$0x1]  ;;  %v2217_v27 = vld [vmem:[%s3561_s0 + $0x1f] sm:$0x1] }
   0x7   :  { %2564 = vmatpush3.bf16.msra.mxu0 %v2821_v3  ;;  %2572 = vmatpush3.bf16.msra.mxu1 %v2822_v4  ;;  %v70_v17 = vunpack.c.l.bf16 %v2214_v15  ;;  %v132_v18 = vunpack.c.l.bf16 %v2215_v16  ;;  %v2216_v32 = vld [vmem:[%s3561_s0 + $0x1e] sm:$0x1]  ;;  %v248_v33 = vunpack.c.l.bf16 %v2217_v27  ;;  %v2833_v2 = vld [vmem:[%s3560_s1 + $0x28] sm:$0xff]   ;;  %v2835_v4 = vld [vmem:[%s3560_s1] sm:$0xff]  }
   0x8   :  { %v58_v7 = vld [vmem:[#allocation2] sm:$0x3]  ;;  %2577 = vmatprep.subr.bf16.mxu0 %v3011_v0  ;;  %2585 = vmatprep.subr.bf16.mxu1 %v3011_v0  ;;  %v190_v34 = vunpack.c.l.bf16 %v2216_v32  ;;  %v59_v52 = vld [vmem:[#allocation3] sm:$0x3]  ;;  %v2834_v3 = vld [vmem:[%s3560_s1 + $0x38] sm:$0xff]  }
   0x9   :  { %v65_v8 = vpack.c.bf16 %v58_v7, %v58_v7  ;;  %v2838_v7 = vld [vmem:[%s3560_s1 + $0x18] sm:$0xff]  }
   0xb   :  { %2566 = vmatmul.mubr.msk.bf16.vlgmr.msra.gmra.mrb[0].mxu0 %vm83_vm2, %v65_v8  ;;  %2574 = vmatmul.mubr.msk.bf16.vlgmr.msra.gmra.mrb[0].mxu1 %vm83_vm2, %v65_v8 }
   0xc   :  { %2578 = vmatpush3.bf16.msra.mxu0 %v2823_v5  ;;  %2586 = vmatpush3.bf16.msra.mxu1 %v2824_v6  ;;  %v2836_v5 = vld [vmem:[%s3560_s1 + $0x10] sm:$0xff]   ;;  %v2837_v6 = vld [vmem:[%s3560_s1 + $0x8] sm:$0xff]  }
   0xd   :  { %2579 = vmatprep.subr.bf16.mxu0 %v3011_v0  ;;  %2587 = vmatprep.subr.bf16.mxu1 %v3011_v0 }
   0xe   :  { %2581 = vmatprep.mubr.msk.bf16.mxu0 %vm3012_vm1, %v3011_v0  ;;  %2589 = vmatprep.mubr.msk.bf16.mxu1 %vm3012_vm1, %v3011_v0 }
  0x10   :  { %2580 = vmatpush3.bf16.msra.mxu0 %v2825_v9  ;;  %2588 = vmatpush3.bf16.msra.mxu1 %v2826_v10  ;;  %v2247_v9 = vld [vmem:[%s3561_s0 + $0x19] sm:$0x1] }
  0x11   :  { %2593 = vmatprep.subr.bf16.mxu0 %v3011_v0  ;;  %2601 = vmatprep.subr.bf16.mxu1 %v3011_v0 }
  0x13   :  { %2582 = vmatmul.mubr.msk.bf16.vlgmr.msra.gmra.mrb[4].mxu0 %vm83_vm2, %v65_v8  ;;  %2590 = vmatmul.mubr.msk.bf16.vlgmr.msra.gmra.mrb[4].mxu1 %vm83_vm2, %v65_v8  ;;  %v2246_v8 = vld [vmem:[%s3561_s0 + $0x18] sm:$0x1] }
  0x14   :  { %2597 = vmatprep.mubr.msk.bf16.mxu0 %vm3012_vm1, %v3011_v0  ;;  %2605 = vmatprep.mubr.msk.bf16.mxu1 %vm3012_vm1, %v3011_v0  ;;  %v338_v10 = vunpack.c.l.bf16 %v2246_v8 }
  0x15   :  { %2594 = vmatpush3.bf16.msra.mxu0 %v2827_v11  ;;  %2602 = vmatpush3.bf16.msra.mxu1 %v2828_v12  ;;  %v398_v11 = vunpack.c.l.bf16 %v2247_v9 }
  0x16   :  { %2595 = vmatprep.subr.bf16.mxu0 %v3011_v0  ;;  %2603 = vmatprep.subr.bf16.mxu1 %v3011_v0 }
  0x19   :  { %2596 = vmatpush3.bf16.msra.mxu0 %v2829_v13  ;;  %2604 = vmatpush3.bf16.msra.mxu1 %v2830_v14 }
  0x1a   :  { %2609 = vmatprep.subr.bf16.mxu0 %v3011_v0  ;;  %2617 = vmatprep.subr.bf16.mxu1 %v3011_v0 }
  0xde   :  { %v121_v19 = vpop.f32.mrb[0].mxu0  ;;  %v179_v20 = vpop.f32.mrb[0].mxu1 }
  0xdf   :  { %v122_v21 = vadd.f32 %v121_v19, %v70_v17  ;;  %v180_v22 = vadd.f32 %v179_v20, %v132_v18  ;;  %v2567_v23 = vpop.f32.mrb[1].mxu0  ;;  %v2575_v24 = vpop.f32.mrb[1].mxu1  ;;  %v2249_v20 = vld [vmem:[%s3561_s0 + $0x1b] sm:$0x1] }
  0xe0   :  { %v124_v25 = vpop.f32.mrb[2].mxu0  ;;  %v182_v26 = vpop.f32.mrb[2].mxu1 }
  0xe1   :  { %v2242_v28 = vmul.f32 -1.442695, %v122_v21  ;;  %v2243_v29 = vmul.f32 -1.442695, %v180_v22  ;;  %v2568_v30 = vpop.f32.mrb[3].mxu0  ;;  %v2576_v31 = vpop.f32.mrb[3].mxu1  ;;  %v512_v25 = vunpack.c.l.bf16 %v2249_v20 }
  0xe2   :  { %v2248_v26 = vld [vmem:[%s3561_s0 + $0x1a] sm:$0x1] }
  0xe3   :  { %2883 = vpow2.f32 %v2242_v28 }
  0xe4   :  { %2885 = vpow2.f32 %v2243_v29  ;;  %v455_v29 = vunpack.c.l.bf16 %v2248_v26 }
  0xe6   :  { %v237_v35 = vpop.f32.mrb[4].mxu0  ;;  %v295_v36 = vpop.f32.mrb[4].mxu1 }
  0xe7   :  { %v296_v37 = vadd.f32 %v295_v36, %v248_v33  ;;  %v2583_v38 = vpop.f32.mrb[5].mxu0  ;;  %v2591_v39 = vpop.f32.mrb[5].mxu1  ;;  %v238_v45 = vadd.f32 %v237_v35, %v190_v34 }
  0xe8   :  { %v240_v40 = vpop.f32.mrb[6].mxu0  ;;  %v298_v41 = vpop.f32.mrb[6].mxu1 }
  0xe9   :  { %v2244_v42 = vmul.f32 -1.442695, %v296_v37  ;;  %v2584_v43 = vpop.f32.mrb[7].mxu0  ;;  %v2592_v44 = vpop.f32.mrb[7].mxu1 }
  0xeb   :  { %2887 = vpow2.f32 %v2244_v42 }
  0xec   :  { %2889 = vtanh.f32 %v238_v45 }
  0xed   :  { %v2884_v46 = vpop.eup %2883 }
  0xee   :  { %v2886_v47 = vpop.eup %2885  ;;  %v304_v48 = vadd.f32 1.0, %v2884_v46 }
  0xef   :  { %v310_v49 = vadd.f32 1.0, %v2886_v47 }
  0xf0   :  { %2891 = vrcp.f32 %v304_v48 }
  0xf1   :  { %2893 = vrcp.f32 %v310_v49 }
  0xf5   :  { %v2888_v50 = vpop.eup %2887 }
  0xf6   :  { %v2890_v51 = vpop.eup %2889  ;;  %v317_v54 = vadd.f32 1.0, %v2888_v50 }
  0xf8   :  { %2895 = vrcp.f32 %v317_v54  ;;  %v2839_v54 = vld [vmem:[%s3560_s1 + $0x20] sm:$0xff]  }
  0xfa   :  { %v2892_v53 = vpop.eup %2891 }
  0xfb   :  { %v2894_v55 = vpop.eup %2893  ;;  %v321_v56 = vmul.f32 %v2892_v53, %v2890_v51 }
  0xfc   :  { %v320_v57 = vmul.f32 %v2894_v55, %v59_v52  ;;  %v2840_v55 = vld [vmem:[%s3560_s1 + $0x30] sm:$0xff]  }
  0xfe   :  { %v3120_v58 = vadd.f32 %v321_v56, %v320_v57  ;;  %v2841_v57 = vld [vmem:[%s3560_s1 + $0x28] sm:$0xff]  }
 0x100   :  { %2897 = vtanh.f32 %v3120_v58 }
 0x102   :  { %v2896_v59 = vpop.eup %2895 }
 0x10a   :  { %v2898_v60 = vpop.eup %2897 }
 0x10b   :  { %v324_v61 = vmul.f32 %v2898_v60, %v2896_v59  ;;  %v2843_v59 = vld [vmem:[%s3560_s1] sm:$0xff]   ;;  %v2844_v60 = vld [vmem:[%s3560_s1 + $0x10] sm:$0xff]  }
 0x10d   :  { %2245 = vst.msk [vmem:[%s3562_s2 + $0xe] sm:$0x3] %vm55_vm0, %v324_v61  ;;  %v333_v1 = vpack.c.bf16 %v324_v61, %v324_v61  ;;  %v2845_v61 = vld [vmem:[%s3560_s1 + $0x8] sm:$0xff]  }
 0x10f   :  { %2598 = vmatmul.mubr.msk.bf16.vlgmr.msra.gmra.mrb[8].mxu0 %vm83_vm2, %v333_v1  ;;  %2606 = vmatmul.mubr.msk.bf16.vlgmr.msra.gmra.mrb[8].mxu1 %vm83_vm2, %v333_v1 }
 0x110   :  { %2610 = vmatpush3.bf16.msra.mxu0 %v2831_v62  ;;  %2618 = vmatpush3.bf16.msra.mxu1 %v2832_v63  ;;  %v2846_v62 = vld [vmem:[%s3560_s1 + $0x18] sm:$0xff]   ;;  %v2278_v63 = vld [vmem:[%s3561_s0 + $0x14] sm:$0x1] }
 0x111   :  { %2611 = vmatprep.subr.bf16.mxu0 %v3011_v0  ;;  %2619 = vmatprep.subr.bf16.mxu1 %v3011_v0 }
 0x112   :  { %2613 = vmatprep.mubr.msk.bf16.mxu0 %vm3012_vm1, %v3011_v0  ;;  %2621 = vmatprep.mubr.msk.bf16.mxu1 %vm3012_vm1, %v3011_v0 }
 0x114   :  { %2612 = vmatpush3.bf16.msra.mxu0 %v2833_v2  ;;  %2620 = vmatpush3.bf16.msra.mxu1 %v2834_v3  ;;  %v601_v2 = vunpack.c.l.bf16 %v2278_v63 }
 0x115   :  { %2625 = vmatprep.subr.bf16.mxu0 %v3011_v0  ;;  %2633 = vmatprep.subr.bf16.mxu1 %v3011_v0 }
 0x117   :  { %2614 = vmatmul.mubr.msk.bf16.vlgmr.msra.gmra.mrb[12].mxu0 %vm83_vm2, %v333_v1  ;;  %2622 = vmatmul.mubr.msk.bf16.vlgmr.msra.gmra.mrb[12].mxu1 %vm83_vm2, %v333_v1  ;;  %v2279_v1 = vld [vmem:[%s3561_s0 + $0x15] sm:$0x1] }
 0x118   :  { %2629 = vmatprep.mubr.msk.bf16.mxu0 %vm3012_vm1, %v3011_v0  ;;  %2637 = vmatprep.mubr.msk.bf16.mxu1 %vm3012_vm1, %v3011_v0  ;;  %v661_v3 = vunpack.c.l.bf16 %v2279_v1 }
 0x119   :  { %2626 = vmatpush3.bf16.msra.mxu0 %v2835_v4  ;;  %2634 = vmatpush3.bf16.msra.mxu1 %v2836_v5 }
 0x11a   :  { %2627 = vmatprep.subr.bf16.mxu0 %v3011_v0  ;;  %2635 = vmatprep.subr.bf16.mxu1 %v3011_v0 }
 0x11d   :  { %2628 = vmatpush3.bf16.msra.mxu0 %v2837_v6  ;;  %2636 = vmatpush3.bf16.msra.mxu1 %v2838_v7 }
 0x11e   :  { %2641 = vmatprep.subr.bf16.mxu0 %v3011_v0  ;;  %2649 = vmatprep.subr.bf16.mxu1 %v3011_v0 }
 0x1e2   :  { %v388_v12 = vpop.f32.mrb[8].mxu0  ;;  %v445_v13 = vpop.f32.mrb[8].mxu1 }
 0x1e3   :  { %v389_v14 = vadd.f32 %v388_v12, %v338_v10  ;;  %v446_v15 = vadd.f32 %v445_v13, %v398_v11  ;;  %v2599_v16 = vpop.f32.mrb[9].mxu0  ;;  %v2607_v17 = vpop.f32.mrb[9].mxu1  ;;  %v2281_v12 = vld [vmem:[%s3561_s0 + $0x17] sm:$0x1] }
 0x1e4   :  { %v391_v18 = vpop.f32.mrb[10].mxu0  ;;  %v448_v19 = vpop.f32.mrb[10].mxu1  ;;  %v775_v17 = vunpack.c.l.bf16 %v2281_v12 }
 0x1e5   :  { %v2274_v21 = vmul.f32 -1.442695, %v389_v14  ;;  %v2275_v22 = vmul.f32 -1.442695, %v446_v15  ;;  %v2600_v23 = vpop.f32.mrb[11].mxu0  ;;  %v2608_v24 = vpop.f32.mrb[11].mxu1 }
 0x1e6   :  { %v2280_v18 = vld [vmem:[%s3561_s0 + $0x16] sm:$0x1] }
 0x1e7   :  { %2899 = vpow2.f32 %v2274_v21  ;;  %v718_v21 = vunpack.c.l.bf16 %v2280_v18 }
 0x1e8   :  { %2901 = vpow2.f32 %v2275_v22 }
 0x1ea   :  { %v502_v27 = vpop.f32.mrb[12].mxu0  ;;  %v559_v28 = vpop.f32.mrb[12].mxu1 }
 0x1eb   :  { %v560_v30 = vadd.f32 %v559_v28, %v512_v25  ;;  %v2615_v31 = vpop.f32.mrb[13].mxu0  ;;  %v2623_v32 = vpop.f32.mrb[13].mxu1  ;;  %v503_v38 = vadd.f32 %v502_v27, %v455_v29 }
 0x1ec   :  { %v505_v33 = vpop.f32.mrb[14].mxu0  ;;  %v562_v34 = vpop.f32.mrb[14].mxu1 }
 0x1ed   :  { %v2616_v35 = vpop.f32.mrb[15].mxu0  ;;  %v2624_v36 = vpop.f32.mrb[15].mxu1  ;;  %v2276_v37 = vmul.f32 -1.442695, %v560_v30 }
 0x1ef   :  { %2903 = vpow2.f32 %v2276_v37 }
 0x1f0   :  { %2905 = vtanh.f32 %v503_v38 }
 0x1f1   :  { %v2900_v39 = vpop.eup %2899 }
 0x1f2   :  { %v2902_v40 = vpop.eup %2901  ;;  %v568_v41 = vadd.f32 1.0, %v2900_v39 }
 0x1f3   :  { %v574_v42 = vadd.f32 1.0, %v2902_v40 }
 0x1f4   :  { %2907 = vrcp.f32 %v568_v41 }
 0x1f5   :  { %2909 = vrcp.f32 %v574_v42 }
 0x1f9   :  { %v2904_v43 = vpop.eup %2903 }
 0x1fa   :  { %v2906_v44 = vpop.eup %2905  ;;  %v581_v48 = vadd.f32 1.0, %v2904_v43 }
 0x1fc   :  { %2911 = vrcp.f32 %v581_v48 }
 0x1fe   :  { %v2908_v45 = vpop.eup %2907 }
 0x1ff   :  { %v2910_v46 = vpop.eup %2909  ;;  %v585_v47 = vmul.f32 %v2908_v45, %v2906_v44 }
 0x200   :  { %v584_v49 = vmul.f32 %v2910_v46, %v3120_v58  ;;  %v2842_v58 = vld [vmem:[%s3560_s1 + $0x38] sm:$0xff]   ;;  %v2847_v46 = vld [vmem:[%s3560_s1 + $0x20] sm:$0xff]  }
 0x202   :  { %v3184_v50 = vadd.f32 %v585_v47, %v584_v49  ;;  %v2848_v47 = vld [vmem:[%s3560_s1 + $0x30] sm:$0xff]   ;;  %v2849_v49 = vld [vmem:[%s3560_s1 + $0x28] sm:$0xff]  }
 0x204   :  { %2913 = vtanh.f32 %v3184_v50 }
 0x206   :  { %v2912_v51 = vpop.eup %2911 }
 0x20e   :  { %v2914_v52 = vpop.eup %2913 }
 0x20f   :  { %v588_v53 = vmul.f32 %v2914_v52, %v2912_v51  ;;  %v2851_v51 = vld [vmem:[%s3560_s1] sm:$0xff]   ;;  %v2852_v52 = vld [vmem:[%s3560_s1 + $0x10] sm:$0xff]  }
 0x211   :  { %2277 = vst.msk [vmem:[%s3562_s2 + $0xc] sm:$0x3] %vm55_vm0, %v588_v53  ;;  %v596_v56 = vpack.c.bf16 %v588_v53, %v588_v53  ;;  %v2853_v53 = vld [vmem:[%s3560_s1 + $0x8] sm:$0xff]  }
 0x213   :  { %2630 = vmatmul.mubr.msk.bf16.vlgmr.msra.gmra.mrb[16].mxu0 %vm83_vm2, %v596_v56  ;;  %2638 = vmatmul.mubr.msk.bf16.vlgmr.msra.gmra.mrb[16].mxu1 %vm83_vm2, %v596_v56 }
 0x214   :  { %2642 = vmatpush3.bf16.msra.mxu0 %v2839_v54  ;;  %2650 = vmatpush3.bf16.msra.mxu1 %v2840_v55  ;;  %v2854_v54 = vld [vmem:[%s3560_s1 + $0x18] sm:$0xff]   ;;  %v2310_v55 = vld [vmem:[%s3561_s0 + $0x10] sm:$0x1] }
 0x215   :  { %2643 = vmatprep.subr.bf16.mxu0 %v3011_v0  ;;  %2651 = vmatprep.subr.bf16.mxu1 %v3011_v0 }
 0x216   :  { %2645 = vmatprep.mubr.msk.bf16.mxu0 %vm3012_vm1, %v3011_v0  ;;  %2653 = vmatprep.mubr.msk.bf16.mxu1 %vm3012_vm1, %v3011_v0 }
 0x218   :  { %2644 = vmatpush3.bf16.msra.mxu0 %v2841_v57  ;;  %2652 = vmatpush3.bf16.msra.mxu1 %v2842_v58  ;;  %v864_v57 = vunpack.c.l.bf16 %v2310_v55 }
 0x219   :  { %2657 = vmatprep.subr.bf16.mxu0 %v3011_v0  ;;  %2665 = vmatprep.subr.bf16.mxu1 %v3011_v0 }
 0x21b   :  { %2646 = vmatmul.mubr.msk.bf16.vlgmr.msra.gmra.mrb[20].mxu0 %vm83_vm2, %v596_v56  ;;  %2654 = vmatmul.mubr.msk.bf16.vlgmr.msra.gmra.mrb[20].mxu1 %vm83_vm2, %v596_v56  ;;  %v2311_v56 = vld [vmem:[%s3561_s0 + $0x11] sm:$0x1] }
 0x21c   :  { %2661 = vmatprep.mubr.msk.bf16.mxu0 %vm3012_vm1, %v3011_v0  ;;  %2669 = vmatprep.mubr.msk.bf16.mxu1 %vm3012_vm1, %v3011_v0  ;;  %v924_v58 = vunpack.c.l.bf16 %v2311_v56 }
 0x21d   :  { %2658 = vmatpush3.bf16.msra.mxu0 %v2843_v59  ;;  %2666 = vmatpush3.bf16.msra.mxu1 %v2844_v60 }
 0x21e   :  { %2659 = vmatprep.subr.bf16.mxu0 %v3011_v0  ;;  %2667 = vmatprep.subr.bf16.mxu1 %v3011_v0 }
 0x221   :  { %2660 = vmatpush3.bf16.msra.mxu0 %v2845_v61  ;;  %2668 = vmatpush3.bf16.msra.mxu1 %v2846_v62 }
 0x222   :  { %2673 = vmatprep.subr.bf16.mxu0 %v3011_v0  ;;  %2681 = vmatprep.subr.bf16.mxu1 %v3011_v0 }
 0x2e6   :  { %v651_v4 = vpop.f32.mrb[16].mxu0  ;;  %v708_v5 = vpop.f32.mrb[16].mxu1 }
 0x2e7   :  { %v652_v6 = vadd.f32 %v651_v4, %v601_v2  ;;  %v709_v7 = vadd.f32 %v708_v5, %v661_v3  ;;  %v2631_v8 = vpop.f32.mrb[17].mxu0  ;;  %v2639_v9 = vpop.f32.mrb[17].mxu1  ;;  %v2313_v4 = vld [vmem:[%s3561_s0 + $0x13] sm:$0x1] }
 0x2e8   :  { %v654_v10 = vpop.f32.mrb[18].mxu0  ;;  %v711_v11 = vpop.f32.mrb[18].mxu1  ;;  %v1038_v9 = vunpack.c.l.bf16 %v2313_v4 }
 0x2e9   :  { %v2306_v13 = vmul.f32 -1.442695, %v652_v6  ;;  %v2307_v14 = vmul.f32 -1.442695, %v709_v7  ;;  %v2632_v15 = vpop.f32.mrb[19].mxu0  ;;  %v2640_v16 = vpop.f32.mrb[19].mxu1 }
 0x2ea   :  { %v2312_v10 = vld [vmem:[%s3561_s0 + $0x12] sm:$0x1] }
 0x2eb   :  { %2915 = vpow2.f32 %v2306_v13  ;;  %v981_v13 = vunpack.c.l.bf16 %v2312_v10 }
 0x2ec   :  { %2917 = vpow2.f32 %v2307_v14 }
 0x2ee   :  { %v765_v19 = vpop.f32.mrb[20].mxu0  ;;  %v822_v20 = vpop.f32.mrb[20].mxu1 }
 0x2ef   :  { %v823_v22 = vadd.f32 %v822_v20, %v775_v17  ;;  %v2647_v23 = vpop.f32.mrb[21].mxu0  ;;  %v2655_v24 = vpop.f32.mrb[21].mxu1  ;;  %v766_v30 = vadd.f32 %v765_v19, %v718_v21 }
 0x2f0   :  { %v768_v25 = vpop.f32.mrb[22].mxu0  ;;  %v825_v26 = vpop.f32.mrb[22].mxu1 }
 0x2f1   :  { %v2648_v27 = vpop.f32.mrb[23].mxu0  ;;  %v2656_v28 = vpop.f32.mrb[23].mxu1  ;;  %v2308_v29 = vmul.f32 -1.442695, %v823_v22 }
 0x2f3   :  { %2919 = vpow2.f32 %v2308_v29 }
 0x2f4   :  { %2921 = vtanh.f32 %v766_v30 }
 0x2f5   :  { %v2916_v31 = vpop.eup %2915 }
 0x2f6   :  { %v2918_v32 = vpop.eup %2917  ;;  %v831_v33 = vadd.f32 1.0, %v2916_v31 }
 0x2f7   :  { %v837_v34 = vadd.f32 1.0, %v2918_v32 }
 0x2f8   :  { %2923 = vrcp.f32 %v831_v33 }
 0x2f9   :  { %2925 = vrcp.f32 %v837_v34 }
 0x2fd   :  { %v2920_v35 = vpop.eup %2919 }
 0x2fe   :  { %v2922_v36 = vpop.eup %2921  ;;  %v844_v40 = vadd.f32 1.0, %v2920_v35 }
 0x300   :  { %2927 = vrcp.f32 %v844_v40 }
 0x302   :  { %v2924_v37 = vpop.eup %2923 }
 0x303   :  { %v2926_v38 = vpop.eup %2925  ;;  %v848_v39 = vmul.f32 %v2924_v37, %v2922_v36 }
 0x304   :  { %v847_v41 = vmul.f32 %v2926_v38, %v3184_v50  ;;  %v2850_v50 = vld [vmem:[%s3560_s1 + $0x38] sm:$0xff]   ;;  %v2855_v38 = vld [vmem:[%s3560_s1 + $0x20] sm:$0xff]  }
 0x306   :  { %v3248_v42 = vadd.f32 %v848_v39, %v847_v41  ;;  %v2856_v39 = vld [vmem:[%s3560_s1 + $0x30] sm:$0xff]   ;;  %v2857_v41 = vld [vmem:[%s3560_s1 + $0x28] sm:$0xff]  }
 0x308   :  { %2929 = vtanh.f32 %v3248_v42 }
 0x30a   :  { %v2928_v43 = vpop.eup %2927 }
 0x312   :  { %v2930_v44 = vpop.eup %2929 }
 0x313   :  { %v851_v45 = vmul.f32 %v2930_v44, %v2928_v43  ;;  %v2859_v43 = vld [vmem:[%s3560_s1] sm:$0xff]   ;;  %v2860_v44 = vld [vmem:[%s3560_s1 + $0x10] sm:$0xff]  }
 0x315   :  { %2309 = vst.msk [vmem:[%s3562_s2 + $0xa] sm:$0x3] %vm55_vm0, %v851_v45  ;;  %v859_v48 = vpack.c.bf16 %v851_v45, %v851_v45  ;;  %v2861_v45 = vld [vmem:[%s3560_s1 + $0x8] sm:$0xff]  }
 0x317   :  { %2662 = vmatmul.mubr.msk.bf16.vlgmr.msra.gmra.mrb[24].mxu0 %vm83_vm2, %v859_v48  ;;  %2670 = vmatmul.mubr.msk.bf16.vlgmr.msra.gmra.mrb[24].mxu1 %vm83_vm2, %v859_v48 }
 0x318   :  { %2674 = vmatpush3.bf16.msra.mxu0 %v2847_v46  ;;  %2682 = vmatpush3.bf16.msra.mxu1 %v2848_v47  ;;  %v2862_v46 = vld [vmem:[%s3560_s1 + $0x18] sm:$0xff]   ;;  %v2342_v47 = vld [vmem:[%s3561_s0 + $0xc] sm:$0x1] }
 0x319   :  { %2675 = vmatprep.subr.bf16.mxu0 %v3011_v0  ;;  %2683 = vmatprep.subr.bf16.mxu1 %v3011_v0 }
 0x31a   :  { %2677 = vmatprep.mubr.msk.bf16.mxu0 %vm3012_vm1, %v3011_v0  ;;  %2685 = vmatprep.mubr.msk.bf16.mxu1 %vm3012_vm1, %v3011_v0 }
 0x31c   :  { %2676 = vmatpush3.bf16.msra.mxu0 %v2849_v49  ;;  %2684 = vmatpush3.bf16.msra.mxu1 %v2850_v50  ;;  %v1127_v49 = vunpack.c.l.bf16 %v2342_v47 }
 0x31d   :  { %2689 = vmatprep.subr.bf16.mxu0 %v3011_v0  ;;  %2697 = vmatprep.subr.bf16.mxu1 %v3011_v0 }
 0x31f   :  { %2678 = vmatmul.mubr.msk.bf16.vlgmr.msra.gmra.mrb[28].mxu0 %vm83_vm2, %v859_v48  ;;  %2686 = vmatmul.mubr.msk.bf16.vlgmr.msra.gmra.mrb[28].mxu1 %vm83_vm2, %v859_v48  ;;  %v2343_v48 = vld [vmem:[%s3561_s0 + $0xd] sm:$0x1] }
 0x320   :  { %2693 = vmatprep.mubr.msk.bf16.mxu0 %vm3012_vm1, %v3011_v0  ;;  %2701 = vmatprep.mubr.msk.bf16.mxu1 %vm3012_vm1, %v3011_v0  ;;  %v1187_v50 = vunpack.c.l.bf16 %v2343_v48 }
 0x321   :  { %2690 = vmatpush3.bf16.msra.mxu0 %v2851_v51  ;;  %2698 = vmatpush3.bf16.msra.mxu1 %v2852_v52 }
 0x322   :  { %2691 = vmatprep.subr.bf16.mxu0 %v3011_v0  ;;  %2699 = vmatprep.subr.bf16.mxu1 %v3011_v0 }
 0x325   :  { %2692 = vmatpush3.bf16.msra.mxu0 %v2853_v53  ;;  %2700 = vmatpush3.bf16.msra.mxu1 %v2854_v54 }
 0x326   :  { %2705 = vmatprep.subr.bf16.mxu0 %v3011_v0  ;;  %2713 = vmatprep.subr.bf16.mxu1 %v3011_v0 }
 0x3ea   :  { %v914_v59 = vpop.f32.mrb[24].mxu0  ;;  %v971_v60 = vpop.f32.mrb[24].mxu1 }
 0x3eb   :  { %v915_v61 = vadd.f32 %v914_v59, %v864_v57  ;;  %v972_v62 = vadd.f32 %v971_v60, %v924_v58  ;;  %v2663_v63 = vpop.f32.mrb[25].mxu0  ;;  %v2671_v1 = vpop.f32.mrb[25].mxu1  ;;  %v2345_v59 = vld [vmem:[%s3561_s0 + $0xf] sm:$0x1] }
 0x3ec   :  { %v917_v2 = vpop.f32.mrb[26].mxu0  ;;  %v974_v3 = vpop.f32.mrb[26].mxu1  ;;  %v1301_v1 = vunpack.c.l.bf16 %v2345_v59 }
 0x3ed   :  { %v2338_v5 = vmul.f32 -1.442695, %v915_v61  ;;  %v2339_v6 = vmul.f32 -1.442695, %v972_v62  ;;  %v2664_v7 = vpop.f32.mrb[27].mxu0  ;;  %v2672_v8 = vpop.f32.mrb[27].mxu1 }
 0x3ee   :  { %v2344_v2 = vld [vmem:[%s3561_s0 + $0xe] sm:$0x1] }
 0x3ef   :  { %2931 = vpow2.f32 %v2338_v5  ;;  %v1244_v5 = vunpack.c.l.bf16 %v2344_v2 }
 0x3f0   :  { %2933 = vpow2.f32 %v2339_v6 }
 0x3f2   :  { %v1028_v11 = vpop.f32.mrb[28].mxu0  ;;  %v1085_v12 = vpop.f32.mrb[28].mxu1 }
 0x3f3   :  { %v1086_v14 = vadd.f32 %v1085_v12, %v1038_v9  ;;  %v2679_v15 = vpop.f32.mrb[29].mxu0  ;;  %v2687_v16 = vpop.f32.mrb[29].mxu1  ;;  %v1029_v22 = vadd.f32 %v1028_v11, %v981_v13 }
 0x3f4   :  { %v1031_v17 = vpop.f32.mrb[30].mxu0  ;;  %v1088_v18 = vpop.f32.mrb[30].mxu1 }
 0x3f5   :  { %v2680_v19 = vpop.f32.mrb[31].mxu0  ;;  %v2688_v20 = vpop.f32.mrb[31].mxu1  ;;  %v2340_v21 = vmul.f32 -1.442695, %v1086_v14 }
 0x3f7   :  { %2935 = vpow2.f32 %v2340_v21 }
 0x3f8   :  { %2937 = vtanh.f32 %v1029_v22 }
 0x3f9   :  { %v2932_v23 = vpop.eup %2931 }
 0x3fa   :  { %v2934_v24 = vpop.eup %2933  ;;  %v1094_v25 = vadd.f32 1.0, %v2932_v23 }
 0x3fb   :  { %v1100_v26 = vadd.f32 1.0, %v2934_v24 }
 0x3fc   :  { %2939 = vrcp.f32 %v1094_v25 }
 0x3fd   :  { %2941 = vrcp.f32 %v1100_v26 }
 0x401   :  { %v2936_v27 = vpop.eup %2935 }
 0x402   :  { %v2938_v28 = vpop.eup %2937  ;;  %v1107_v32 = vadd.f32 1.0, %v2936_v27 }
 0x404   :  { %2943 = vrcp.f32 %v1107_v32 }
 0x406   :  { %v2940_v29 = vpop.eup %2939 }
 0x407   :  { %v2942_v30 = vpop.eup %2941  ;;  %v1111_v31 = vmul.f32 %v2940_v29, %v2938_v28 }
 0x408   :  { %v1110_v33 = vmul.f32 %v2942_v30, %v3248_v42  ;;  %v2858_v42 = vld [vmem:[%s3560_s1 + $0x38] sm:$0xff]   ;;  %v2863_v30 = vld [vmem:[%s3560_s1 + $0x20] sm:$0xff]  }
 0x40a   :  { %v3312_v34 = vadd.f32 %v1111_v31, %v1110_v33  ;;  %v2864_v31 = vld [vmem:[%s3560_s1 + $0x30] sm:$0xff]   ;;  %v2865_v33 = vld [vmem:[%s3560_s1 + $0x28] sm:$0xff]  }
 0x40c   :  { %2945 = vtanh.f32 %v3312_v34 }
 0x40e   :  { %v2944_v35 = vpop.eup %2943 }
 0x416   :  { %v2946_v36 = vpop.eup %2945 }
 0x417   :  { %v1114_v37 = vmul.f32 %v2946_v36, %v2944_v35  ;;  %v2867_v35 = vld [vmem:[%s3560_s1] sm:$0xff]   ;;  %v2868_v36 = vld [vmem:[%s3560_s1 + $0x10] sm:$0xff]  }
 0x419   :  { %2341 = vst.msk [vmem:[%s3562_s2 + $0x8] sm:$0x3] %vm55_vm0, %v1114_v37  ;;  %v1122_v40 = vpack.c.bf16 %v1114_v37, %v1114_v37  ;;  %v2869_v37 = vld [vmem:[%s3560_s1 + $0x8] sm:$0xff]  }
 0x41b   :  { %2694 = vmatmul.mubr.msk.bf16.vlgmr.msra.gmra.mrb[32].mxu0 %vm83_vm2, %v1122_v40  ;;  %2702 = vmatmul.mubr.msk.bf16.vlgmr.msra.gmra.mrb[32].mxu1 %vm83_vm2, %v1122_v40 }
 0x41c   :  { %2706 = vmatpush3.bf16.msra.mxu0 %v2855_v38  ;;  %2714 = vmatpush3.bf16.msra.mxu1 %v2856_v39  ;;  %v2870_v38 = vld [vmem:[%s3560_s1 + $0x18] sm:$0xff]   ;;  %v2374_v39 = vld [vmem:[%s3561_s0 + $0x8] sm:$0x1] }
 0x41d   :  { %2707 = vmatprep.subr.bf16.mxu0 %v3011_v0  ;;  %2715 = vmatprep.subr.bf16.mxu1 %v3011_v0 }
 0x41e   :  { %2709 = vmatprep.mubr.msk.bf16.mxu0 %vm3012_vm1, %v3011_v0  ;;  %2717 = vmatprep.mubr.msk.bf16.mxu1 %vm3012_vm1, %v3011_v0 }
 0x420   :  { %2708 = vmatpush3.bf16.msra.mxu0 %v2857_v41  ;;  %2716 = vmatpush3.bf16.msra.mxu1 %v2858_v42  ;;  %v1390_v41 = vunpack.c.l.bf16 %v2374_v39 }
 0x421   :  { %2721 = vmatprep.subr.bf16.mxu0 %v3011_v0  ;;  %2729 = vmatprep.subr.bf16.mxu1 %v3011_v0 }
 0x423   :  { %2710 = vmatmul.mubr.msk.bf16.vlgmr.msra.gmra.mrb[36].mxu0 %vm83_vm2, %v1122_v40  ;;  %2718 = vmatmul.mubr.msk.bf16.vlgmr.msra.gmra.mrb[36].mxu1 %vm83_vm2, %v1122_v40  ;;  %v2375_v40 = vld [vmem:[%s3561_s0 + $0x9] sm:$0x1] }
 0x424   :  { %2725 = vmatprep.mubr.msk.bf16.mxu0 %vm3012_vm1, %v3011_v0  ;;  %2733 = vmatprep.mubr.msk.bf16.mxu1 %vm3012_vm1, %v3011_v0  ;;  %v1450_v42 = vunpack.c.l.bf16 %v2375_v40 }
 0x425   :  { %2722 = vmatpush3.bf16.msra.mxu0 %v2859_v43  ;;  %2730 = vmatpush3.bf16.msra.mxu1 %v2860_v44 }
 0x426   :  { %2723 = vmatprep.subr.bf16.mxu0 %v3011_v0  ;;  %2731 = vmatprep.subr.bf16.mxu1 %v3011_v0 }
 0x429   :  { %2724 = vmatpush3.bf16.msra.mxu0 %v2861_v45  ;;  %2732 = vmatpush3.bf16.msra.mxu1 %v2862_v46 }
 0x42a   :  { %2737 = vmatprep.subr.bf16.mxu0 %v3011_v0  ;;  %2745 = vmatprep.subr.bf16.mxu1 %v3011_v0 }
 0x4ee   :  { %v1177_v51 = vpop.f32.mrb[32].mxu0  ;;  %v1234_v52 = vpop.f32.mrb[32].mxu1 }
 0x4ef   :  { %v1178_v53 = vadd.f32 %v1177_v51, %v1127_v49  ;;  %v1235_v54 = vadd.f32 %v1234_v52, %v1187_v50  ;;  %v2695_v55 = vpop.f32.mrb[33].mxu0  ;;  %v2703_v56 = vpop.f32.mrb[33].mxu1  ;;  %v2377_v51 = vld [vmem:[%s3561_s0 + $0xb] sm:$0x1] }
 0x4f0   :  { %v1180_v57 = vpop.f32.mrb[34].mxu0  ;;  %v1237_v58 = vpop.f32.mrb[34].mxu1  ;;  %v1564_v56 = vunpack.c.l.bf16 %v2377_v51 }
 0x4f1   :  { %v2370_v60 = vmul.f32 -1.442695, %v1178_v53  ;;  %v2371_v61 = vmul.f32 -1.442695, %v1235_v54  ;;  %v2696_v62 = vpop.f32.mrb[35].mxu0  ;;  %v2704_v63 = vpop.f32.mrb[35].mxu1 }
 0x4f2   :  { %v2376_v57 = vld [vmem:[%s3561_s0 + $0xa] sm:$0x1] }
 0x4f3   :  { %2947 = vpow2.f32 %v2370_v60  ;;  %v1507_v60 = vunpack.c.l.bf16 %v2376_v57 }
 0x4f4   :  { %2949 = vpow2.f32 %v2371_v61 }
 0x4f6   :  { %v1291_v3 = vpop.f32.mrb[36].mxu0  ;;  %v1348_v4 = vpop.f32.mrb[36].mxu1 }
 0x4f7   :  { %v1349_v6 = vadd.f32 %v1348_v4, %v1301_v1  ;;  %v2711_v7 = vpop.f32.mrb[37].mxu0  ;;  %v2719_v8 = vpop.f32.mrb[37].mxu1  ;;  %v1292_v14 = vadd.f32 %v1291_v3, %v1244_v5 }
 0x4f8   :  { %v1294_v9 = vpop.f32.mrb[38].mxu0  ;;  %v1351_v10 = vpop.f32.mrb[38].mxu1 }
 0x4f9   :  { %v2712_v11 = vpop.f32.mrb[39].mxu0  ;;  %v2720_v12 = vpop.f32.mrb[39].mxu1  ;;  %v2372_v13 = vmul.f32 -1.442695, %v1349_v6 }
 0x4fb   :  { %2951 = vpow2.f32 %v2372_v13 }
 0x4fc   :  { %2953 = vtanh.f32 %v1292_v14 }
 0x4fd   :  { %v2948_v15 = vpop.eup %2947 }
 0x4fe   :  { %v2950_v16 = vpop.eup %2949  ;;  %v1357_v17 = vadd.f32 1.0, %v2948_v15 }
 0x4ff   :  { %v1363_v18 = vadd.f32 1.0, %v2950_v16 }
 0x500   :  { %2955 = vrcp.f32 %v1357_v17 }
 0x501   :  { %2957 = vrcp.f32 %v1363_v18 }
 0x505   :  { %v2952_v19 = vpop.eup %2951 }
 0x506   :  { %v2954_v20 = vpop.eup %2953  ;;  %v1370_v24 = vadd.f32 1.0, %v2952_v19 }
 0x508   :  { %2959 = vrcp.f32 %v1370_v24 }
 0x50a   :  { %v2956_v21 = vpop.eup %2955 }
 0x50b   :  { %v2958_v22 = vpop.eup %2957  ;;  %v1374_v23 = vmul.f32 %v2956_v21, %v2954_v20 }
 0x50c   :  { %v1373_v25 = vmul.f32 %v2958_v22, %v3312_v34  ;;  %v2866_v34 = vld [vmem:[%s3560_s1 + $0x38] sm:$0xff]   ;;  %v2871_v22 = vld [vmem:[%s3560_s1 + $0x20] sm:$0xff]  }
 0x50e   :  { %v3376_v26 = vadd.f32 %v1374_v23, %v1373_v25  ;;  %v2872_v23 = vld [vmem:[%s3560_s1 + $0x30] sm:$0xff]   ;;  %v2873_v25 = vld [vmem:[%s3560_s1 + $0x28] sm:$0xff]  }
 0x510   :  { %2961 = vtanh.f32 %v3376_v26 }
 0x512   :  { %v2960_v27 = vpop.eup %2959 }
 0x51a   :  { %v2962_v28 = vpop.eup %2961 }
 0x51b   :  { %v1377_v29 = vmul.f32 %v2962_v28, %v2960_v27  ;;  %v2875_v27 = vld [vmem:[%s3560_s1] sm:$0xff]   ;;  %v2876_v28 = vld [vmem:[%s3560_s1 + $0x10] sm:$0xff]  }
 0x51d   :  { %2373 = vst.msk [vmem:[%s3562_s2 + $0x6] sm:$0x3] %vm55_vm0, %v1377_v29  ;;  %v1385_v32 = vpack.c.bf16 %v1377_v29, %v1377_v29  ;;  %v2877_v29 = vld [vmem:[%s3560_s1 + $0x8] sm:$0xff]  }
 0x51f   :  { %2726 = vmatmul.mubr.msk.bf16.vlgmr.msra.gmra.mrb[40].mxu0 %vm83_vm2, %v1385_v32  ;;  %2734 = vmatmul.mubr.msk.bf16.vlgmr.msra.gmra.mrb[40].mxu1 %vm83_vm2, %v1385_v32 }
 0x520   :  { %2738 = vmatpush3.bf16.msra.mxu0 %v2863_v30  ;;  %2746 = vmatpush3.bf16.msra.mxu1 %v2864_v31  ;;  %v2878_v30 = vld [vmem:[%s3560_s1 + $0x18] sm:$0xff]   ;;  %v2406_v31 = vld [vmem:[%s3561_s0 + $0x4] sm:$0x1] }
 0x521   :  { %2739 = vmatprep.subr.bf16.mxu0 %v3011_v0  ;;  %2747 = vmatprep.subr.bf16.mxu1 %v3011_v0 }
 0x522   :  { %2741 = vmatprep.mubr.msk.bf16.mxu0 %vm3012_vm1, %v3011_v0  ;;  %2749 = vmatprep.mubr.msk.bf16.mxu1 %vm3012_vm1, %v3011_v0 }
 0x524   :  { %2740 = vmatpush3.bf16.msra.mxu0 %v2865_v33  ;;  %2748 = vmatpush3.bf16.msra.mxu1 %v2866_v34  ;;  %v1653_v33 = vunpack.c.l.bf16 %v2406_v31 }
 0x525   :  { %2753 = vmatprep.subr.bf16.mxu0 %v3011_v0  ;;  %2761 = vmatprep.subr.bf16.mxu1 %v3011_v0 }
 0x527   :  { %2742 = vmatmul.mubr.msk.bf16.vlgmr.msra.gmra.mrb[44].mxu0 %vm83_vm2, %v1385_v32  ;;  %2750 = vmatmul.mubr.msk.bf16.vlgmr.msra.gmra.mrb[44].mxu1 %vm83_vm2, %v1385_v32  ;;  %v2407_v32 = vld [vmem:[%s3561_s0 + $0x5] sm:$0x1] }
 0x528   :  { %2757 = vmatprep.mubr.msk.bf16.mxu0 %vm3012_vm1, %v3011_v0  ;;  %2765 = vmatprep.mubr.msk.bf16.mxu1 %vm3012_vm1, %v3011_v0  ;;  %v1713_v34 = vunpack.c.l.bf16 %v2407_v32 }
 0x529   :  { %2754 = vmatpush3.bf16.msra.mxu0 %v2867_v35  ;;  %2762 = vmatpush3.bf16.msra.mxu1 %v2868_v36 }
 0x52a   :  { %2755 = vmatprep.subr.bf16.mxu0 %v3011_v0  ;;  %2763 = vmatprep.subr.bf16.mxu1 %v3011_v0 }
 0x52d   :  { %2756 = vmatpush3.bf16.msra.mxu0 %v2869_v37  ;;  %2764 = vmatpush3.bf16.msra.mxu1 %v2870_v38 }
 0x52e   :  { %2769 = vmatprep.subr.bf16.mxu0 %v3011_v0  ;;  %2777 = vmatprep.subr.bf16.mxu1 %v3011_v0 }
 0x5f2   :  { %v1440_v43 = vpop.f32.mrb[40].mxu0  ;;  %v1497_v44 = vpop.f32.mrb[40].mxu1 }
 0x5f3   :  { %v1441_v45 = vadd.f32 %v1440_v43, %v1390_v41  ;;  %v1498_v46 = vadd.f32 %v1497_v44, %v1450_v42  ;;  %v2727_v47 = vpop.f32.mrb[41].mxu0  ;;  %v2735_v48 = vpop.f32.mrb[41].mxu1  ;;  %v2409_v43 = vld [vmem:[%s3561_s0 + $0x7] sm:$0x1] }
 0x5f4   :  { %v1443_v49 = vpop.f32.mrb[42].mxu0  ;;  %v1500_v50 = vpop.f32.mrb[42].mxu1  ;;  %v1827_v48 = vunpack.c.l.bf16 %v2409_v43 }
 0x5f5   :  { %v2402_v52 = vmul.f32 -1.442695, %v1441_v45  ;;  %v2403_v53 = vmul.f32 -1.442695, %v1498_v46  ;;  %v2728_v54 = vpop.f32.mrb[43].mxu0  ;;  %v2736_v55 = vpop.f32.mrb[43].mxu1 }
 0x5f6   :  { %v2408_v49 = vld [vmem:[%s3561_s0 + $0x6] sm:$0x1] }
 0x5f7   :  { %2963 = vpow2.f32 %v2402_v52  ;;  %v1770_v52 = vunpack.c.l.bf16 %v2408_v49 }
 0x5f8   :  { %2965 = vpow2.f32 %v2403_v53 }
 0x5fa   :  { %v1554_v58 = vpop.f32.mrb[44].mxu0  ;;  %v1611_v59 = vpop.f32.mrb[44].mxu1 }
 0x5fb   :  { %v1612_v61 = vadd.f32 %v1611_v59, %v1564_v56  ;;  %v2743_v62 = vpop.f32.mrb[45].mxu0  ;;  %v2751_v63 = vpop.f32.mrb[45].mxu1  ;;  %v1555_v6 = vadd.f32 %v1554_v58, %v1507_v60 }
 0x5fc   :  { %v1557_v1 = vpop.f32.mrb[46].mxu0  ;;  %v1614_v2 = vpop.f32.mrb[46].mxu1 }
 0x5fd   :  { %v2744_v3 = vpop.f32.mrb[47].mxu0  ;;  %v2752_v4 = vpop.f32.mrb[47].mxu1  ;;  %v2404_v5 = vmul.f32 -1.442695, %v1612_v61 }
 0x5ff   :  { %2967 = vpow2.f32 %v2404_v5 }
 0x600   :  { %2969 = vtanh.f32 %v1555_v6 }
 0x601   :  { %v2964_v7 = vpop.eup %2963 }
 0x602   :  { %v2966_v8 = vpop.eup %2965  ;;  %v1620_v9 = vadd.f32 1.0, %v2964_v7 }
 0x603   :  { %v1626_v10 = vadd.f32 1.0, %v2966_v8 }
 0x604   :  { %2971 = vrcp.f32 %v1620_v9 }
 0x605   :  { %2973 = vrcp.f32 %v1626_v10 }
 0x609   :  { %v2968_v11 = vpop.eup %2967 }
 0x60a   :  { %v2970_v12 = vpop.eup %2969  ;;  %v1633_v16 = vadd.f32 1.0, %v2968_v11 }
 0x60c   :  { %2975 = vrcp.f32 %v1633_v16 }
 0x60e   :  { %v2972_v13 = vpop.eup %2971 }
 0x60f   :  { %v2974_v14 = vpop.eup %2973  ;;  %v1637_v15 = vmul.f32 %v2972_v13, %v2970_v12 }
 0x610   :  { %v1636_v17 = vmul.f32 %v2974_v14, %v3376_v26  ;;  %v2874_v26 = vld [vmem:[%s3560_s1 + $0x38] sm:$0xff]   ;;  %v2879_v14 = vld [vmem:[%s3560_s1 + $0x20] sm:$0xff]  }
 0x612   :  { %v3440_v18 = vadd.f32 %v1637_v15, %v1636_v17  ;;  %v2880_v15 = vld [vmem:[%s3560_s1 + $0x30] sm:$0xff]   ;;  %v2881_v17 = vld [vmem:[%s3560_s1 + $0x28] sm:$0xff]  }
 0x614   :  { %2977 = vtanh.f32 %v3440_v18 }
 0x616   :  { %v2976_v19 = vpop.eup %2975 }
 0x61e   :  { %v2978_v20 = vpop.eup %2977 }
 0x61f   :  { %v1640_v21 = vmul.f32 %v2978_v20, %v2976_v19  ;;  %v1906_v19 = vld [vmem:[%s3561_s0] sm:$0x1]  ;;  %v1907_v20 = vld [vmem:[%s3561_s0 + $0x1] sm:$0x1] }
 0x621   :  { %2405 = vst.msk [vmem:[%s3562_s2 + $0x4] sm:$0x3] %vm55_vm0, %v1640_v21  ;;  %v1648_v24 = vpack.c.bf16 %v1640_v21, %v1640_v21  ;;  %v1915_v21 = vunpack.c.l.bf16 %v1906_v19 }
 0x623   :  { %2758 = vmatmul.mubr.msk.bf16.vlgmr.msra.gmra.mrb[48].mxu0 %vm83_vm2, %v1648_v24  ;;  %2766 = vmatmul.mubr.msk.bf16.vlgmr.msra.gmra.mrb[48].mxu1 %vm83_vm2, %v1648_v24 }
 0x624   :  { %2770 = vmatpush3.bf16.msra.mxu0 %v2871_v22  ;;  %2778 = vmatpush3.bf16.msra.mxu1 %v2872_v23  ;;  %v1975_v22 = vunpack.c.l.bf16 %v1907_v20 }
 0x625   :  { %2771 = vmatprep.subr.bf16.mxu0 %v3011_v0  ;;  %2779 = vmatprep.subr.bf16.mxu1 %v3011_v0 }
 0x626   :  { %2773 = vmatprep.mubr.msk.bf16.mxu0 %vm3012_vm1, %v3011_v0  ;;  %2781 = vmatprep.mubr.msk.bf16.mxu1 %vm3012_vm1, %v3011_v0 }
 0x628   :  { %2772 = vmatpush3.bf16.msra.mxu0 %v2873_v25  ;;  %2780 = vmatpush3.bf16.msra.mxu1 %v2874_v26 }
 0x629   :  { %2785 = vmatprep.subr.bf16.mxu0 %v3011_v0  ;;  %2793 = vmatprep.subr.bf16.mxu1 %v3011_v0 }
 0x62b   :  { %2774 = vmatmul.mubr.msk.bf16.vlgmr.msra.gmra.mrb[52].mxu0 %vm83_vm2, %v1648_v24  ;;  %2782 = vmatmul.mubr.msk.bf16.vlgmr.msra.gmra.mrb[52].mxu1 %vm83_vm2, %v1648_v24 }
 0x62c   :  { %2789 = vmatprep.mubr.msk.bf16.mxu0 %vm3012_vm1, %v3011_v0  ;;  %2797 = vmatprep.mubr.msk.bf16.mxu1 %vm3012_vm1, %v3011_v0 }
 0x62d   :  { %2786 = vmatpush3.bf16.msra.mxu0 %v2875_v27  ;;  %2794 = vmatpush3.bf16.msra.mxu1 %v2876_v28 }
 0x62e   :  { %2787 = vmatprep.subr.bf16.mxu0 %v3011_v0  ;;  %2795 = vmatprep.subr.bf16.mxu1 %v3011_v0 }
 0x631   :  { %2788 = vmatpush3.bf16.msra.mxu0 %v2877_v29  ;;  %2796 = vmatpush3.bf16.msra.mxu1 %v2878_v30  ;;  %v1909_v30 = vld [vmem:[%s3561_s0 + $0x3] sm:$0x1] }
 0x632   :  { %2801 = vmatprep.subr.bf16.mxu0 %v3011_v0  ;;  %2809 = vmatprep.subr.bf16.mxu1 %v3011_v0 }
 0x6f6   :  { %v1703_v35 = vpop.f32.mrb[48].mxu0  ;;  %v1760_v36 = vpop.f32.mrb[48].mxu1 }
 0x6f7   :  { %v1704_v37 = vadd.f32 %v1703_v35, %v1653_v33  ;;  %v1761_v38 = vadd.f32 %v1760_v36, %v1713_v34  ;;  %v2759_v39 = vpop.f32.mrb[49].mxu0  ;;  %v2767_v40 = vpop.f32.mrb[49].mxu1  ;;  %v2089_v35 = vunpack.c.l.bf16 %v1909_v30  ;;  %v1908_v36 = vld [vmem:[%s3561_s0 + $0x2] sm:$0x1] }
 0x6f8   :  { %v1706_v41 = vpop.f32.mrb[50].mxu0  ;;  %v1763_v42 = vpop.f32.mrb[50].mxu1  ;;  %v2032_v39 = vunpack.c.l.bf16 %v1908_v36 }
 0x6f9   :  { %v2434_v44 = vmul.f32 -1.442695, %v1704_v37  ;;  %v2435_v45 = vmul.f32 -1.442695, %v1761_v38  ;;  %v2760_v46 = vpop.f32.mrb[51].mxu0  ;;  %v2768_v47 = vpop.f32.mrb[51].mxu1 }
 0x6fb   :  { %2979 = vpow2.f32 %v2434_v44 }
 0x6fc   :  { %2981 = vpow2.f32 %v2435_v45 }
 0x6fe   :  { %v1817_v50 = vpop.f32.mrb[52].mxu0  ;;  %v1874_v51 = vpop.f32.mrb[52].mxu1 }
 0x6ff   :  { %v1875_v53 = vadd.f32 %v1874_v51, %v1827_v48  ;;  %v2775_v54 = vpop.f32.mrb[53].mxu0  ;;  %v2783_v55 = vpop.f32.mrb[53].mxu1  ;;  %v1818_v61 = vadd.f32 %v1817_v50, %v1770_v52 }
 0x700   :  { %v1820_v56 = vpop.f32.mrb[54].mxu0  ;;  %v1877_v57 = vpop.f32.mrb[54].mxu1 }
 0x701   :  { %v2776_v58 = vpop.f32.mrb[55].mxu0  ;;  %v2784_v59 = vpop.f32.mrb[55].mxu1  ;;  %v2436_v60 = vmul.f32 -1.442695, %v1875_v53 }
 0x703   :  { %2983 = vpow2.f32 %v2436_v60 }
 0x704   :  { %2985 = vtanh.f32 %v1818_v61 }
 0x705   :  { %v2980_v62 = vpop.eup %2979 }
 0x706   :  { %v2982_v63 = vpop.eup %2981  ;;  %v1883_v1 = vadd.f32 1.0, %v2980_v62 }
 0x707   :  { %v1889_v2 = vadd.f32 1.0, %v2982_v63 }
 0x708   :  { %2987 = vrcp.f32 %v1883_v1 }
 0x709   :  { %2989 = vrcp.f32 %v1889_v2 }
 0x70d   :  { %v2984_v3 = vpop.eup %2983 }
 0x70e   :  { %v2986_v4 = vpop.eup %2985  ;;  %v1896_v8 = vadd.f32 1.0, %v2984_v3 }
 0x710   :  { %2991 = vrcp.f32 %v1896_v8 }
 0x712   :  { %v2988_v5 = vpop.eup %2987 }
 0x713   :  { %v2990_v6 = vpop.eup %2989  ;;  %v1900_v7 = vmul.f32 %v2988_v5, %v2986_v4 }
 0x714   :  { %v1899_v9 = vmul.f32 %v2990_v6, %v3440_v18  ;;  %v2882_v18 = vld [vmem:[%s3560_s1 + $0x38] sm:$0xff]  }
 0x716   :  { %v3504_v10 = vadd.f32 %v1900_v7, %v1899_v9 }
 0x718   :  { %2993 = vtanh.f32 %v3504_v10 }
 0x71a   :  { %v2992_v11 = vpop.eup %2991 }
 0x722   :  { %v2994_v12 = vpop.eup %2993 }
 0x723   :  { %v1903_v13 = vmul.f32 %v2994_v12, %v2992_v11 }
 0x725   :  { %2437 = vst.msk [vmem:[%s3562_s2 + $0x2] sm:$0x3] %vm55_vm0, %v1903_v13  ;;  %v1910_v16 = vpack.c.bf16 %v1903_v13, %v1903_v13 }
 0x727   :  { %2790 = vmatmul.mubr.msk.bf16.vlgmr.msra.gmra.mrb[56].mxu0 %vm83_vm2, %v1910_v16  ;;  %2798 = vmatmul.mubr.msk.bf16.vlgmr.msra.gmra.mrb[56].mxu1 %vm83_vm2, %v1910_v16 }
 0x728   :  { %2802 = vmatpush3.bf16.msra.mxu0 %v2879_v14  ;;  %2810 = vmatpush3.bf16.msra.mxu1 %v2880_v15 }
 0x729   :  { %2803 = vmatprep.subr.bf16.mxu0 %v3011_v0  ;;  %2811 = vmatprep.subr.bf16.mxu1 %v3011_v0 }
 0x72a   :  { %2805 = vmatprep.mubr.msk.bf16.mxu0 %vm3012_vm1, %v3011_v0  ;;  %2813 = vmatprep.mubr.msk.bf16.mxu1 %vm3012_vm1, %v3011_v0 }
 0x72c   :  { %2804 = vmatpush3.bf16.msra.mxu0 %v2881_v17  ;;  %2812 = vmatpush3.bf16.msra.mxu1 %v2882_v18 }
 0x72f   :  { %2806 = vmatmul.mubr.msk.bf16.vlgmr.msra.gmra.mrb[60].mxu0 %vm83_vm2, %v1910_v16  ;;  %2814 = vmatmul.mubr.msk.bf16.vlgmr.msra.gmra.mrb[60].mxu1 %vm83_vm2, %v1910_v16 }
 0x7fa   :  { %v1965_v23 = vpop.f32.mrb[56].mxu0  ;;  %v2022_v24 = vpop.f32.mrb[56].mxu1 }
 0x7fb   :  { %v1966_v25 = vadd.f32 %v1965_v23, %v1915_v21  ;;  %v2023_v0 = vadd.f32 %v2022_v24, %v1975_v22  ;;  %v2791_v26 = vpop.f32.mrb[57].mxu0  ;;  %v2799_v27 = vpop.f32.mrb[57].mxu1 }
 0x7fc   :  { %v1968_v28 = vpop.f32.mrb[58].mxu0  ;;  %v2025_v29 = vpop.f32.mrb[58].mxu1 }
 0x7fd   :  { %v2462_v31 = vmul.f32 -1.442695, %v1966_v25  ;;  %v2463_v32 = vmul.f32 -1.442695, %v2023_v0  ;;  %v2792_v33 = vpop.f32.mrb[59].mxu0  ;;  %v2800_v34 = vpop.f32.mrb[59].mxu1 }
 0x7ff   :  { %2995 = vpow2.f32 %v2462_v31 }
 0x800   :  { %2997 = vpow2.f32 %v2463_v32 }
 0x802   :  { %v2079_v37 = vpop.f32.mrb[60].mxu0  ;;  %v2136_v38 = vpop.f32.mrb[60].mxu1 }
 0x803   :  { %v2137_v40 = vadd.f32 %v2136_v38, %v2089_v35  ;;  %v2807_v41 = vpop.f32.mrb[61].mxu0  ;;  %v2815_v42 = vpop.f32.mrb[61].mxu1  ;;  %v2080_v48 = vadd.f32 %v2079_v37, %v2032_v39 }
 0x804   :  { %v2082_v43 = vpop.f32.mrb[62].mxu0  ;;  %v2139_v44 = vpop.f32.mrb[62].mxu1 }
 0x805   :  { %v2808_v45 = vpop.f32.mrb[63].mxu0  ;;  %v2816_v46 = vpop.f32.mrb[63].mxu1  ;;  %v2464_v47 = vmul.f32 -1.442695, %v2137_v40 }
 0x807   :  { %2999 = vpow2.f32 %v2464_v47 }
 0x808   :  { %3001 = vtanh.f32 %v2080_v48 }
 0x809   :  { %v2996_v49 = vpop.eup %2995 }
 0x80a   :  { %v2998_v50 = vpop.eup %2997  ;;  %v2145_v51 = vadd.f32 1.0, %v2996_v49 }
 0x80b   :  { %v2151_v52 = vadd.f32 1.0, %v2998_v50 }
 0x80c   :  { %3003 = vrcp.f32 %v2145_v51 }
 0x80d   :  { %3005 = vrcp.f32 %v2151_v52 }
 0x811   :  { %v3000_v53 = vpop.eup %2999 }
 0x812   :  { %v3002_v54 = vpop.eup %3001  ;;  %v2158_v58 = vadd.f32 1.0, %v3000_v53 }
 0x814   :  { %3007 = vrcp.f32 %v2158_v58 }
 0x816   :  { %v3004_v55 = vpop.eup %3003 }
 0x817   :  { %v3006_v56 = vpop.eup %3005  ;;  %v2162_v57 = vmul.f32 %v3004_v55, %v3002_v54 }
 0x818   :  { %v2161_v59 = vmul.f32 %v3006_v56, %v3504_v10 }
 0x81a   :  { %v2163_v60 = vadd.f32 %v2162_v57, %v2161_v59 }
 0x81c   :  { %3009 = vtanh.f32 %v2163_v60  ;;  %2168 = vst.msk [vmem:[#allocation3] sm:$0x3] %vm55_vm0, %v2163_v60  ;;  %2173 = vst.msk [vmem:[%s3563_s4] sm:$0x3] %vm55_vm0, %v2163_v60 }
 0x81e   :  { %v3008_v61 = vpop.eup %3007 }
 0x826   :  { %v3010_v62 = vpop.eup %3009 }
 0x827   :  { %v2165_v63 = vmul.f32 %v3010_v62, %v3008_v61 }
 0x829   :  { %2166 = vst.msk [vmem:[%s3562_s2] sm:$0x3] %vm55_vm0, %v2165_v63  ;;  %2167 = vst.msk [vmem:[#allocation2] sm:$0x3] %vm55_vm0, %v2165_v63 }
 0x82a   :  { %2172 = vst.msk [vmem:[%s3564_s3] sm:$0x3] %vm55_vm0, %v2165_v63 }

</bundles_post_ra>
